<compile_context>
chip_gen: v6e
topology: v6e:2x2x1
jax: 0.10.0
libtpu: 0.0.40
codegen_flags: <defaults>
</compile_context>

<pallas_src>
import functools

import jax
import jax.numpy as jnp
import numpy as np
from jax import lax
from jax.experimental import pallas as pl
from jax.experimental.pallas import tpu as pltpu

EPS = 1e-5


# --------------------------------- kernel ----------------------------------
def _double_conv_kernel(x_ref, wt1_ref, g1_ref, be1_ref, sel1_ref, selt1_ref,
                        wt2_ref, g2_ref, be2_ref, sel2_ref, selt2_ref,
                        o_ref, mid_ref, *, N, H, W, Cmid, Cout):
    """Fused (conv3x3 pad=1 -> BN(train) -> ReLU) x 2 on 2-D lane-dense slabs.

    x_ref:     (N*(H+2), W*Cin)     vertically zero-padded input slab
    wt*_ref:   (3, W*Cs_in, W*Cs_out) Toeplitz-expanded conv weights (per kh)
    g*/be*:    (1, Cs_out)          BN gamma / beta
    sel*_ref:  (W*Cs_out, Cs_out)   folds the W lane-copies of each channel
    selt*_ref: (Cs_out, W*Cs_out)   broadcasts per-channel values back to lanes
    o_ref:     (N*H, W*Cout)        lane-dense output slab
    mid_ref:   (N*(H+2), W*Cmid)    VMEM scratch: padded stage-1 activation
    """
    Hp = H + 2

    def gather_rows(ref, kh):
        # Output row (n, h) needs padded slab row n*Hp + h + kh.
        blocks = [ref[pl.ds(n * Hp + kh, H), :] for n in range(N)]
        return blocks[0] if N == 1 else jnp.concatenate(blocks, axis=0)

    def conv_bn_relu(src_ref, wt_ref, g_ref, be_ref, sel_ref, selt_ref, k_out):
        # --- conv: one wide MXU GEMM per kernel row (K = W*C_in) ---
        acc = jnp.dot(gather_rows(src_ref, 0), wt_ref[0],
                      preferred_element_type=jnp.float32)
        for kh in (1, 2):
            acc = acc + jnp.dot(gather_rows(src_ref, kh), wt_ref[kh],
                                preferred_element_type=jnp.float32)
        # (N*H, W*k_out), fp32.  Conv bias omitted: absorbed by the batch mean.

        # --- BatchNorm2d training forward (biased var) via MXU reductions ---
        m_total = float(N * H * W)
        ones = jnp.ones((1, N * H), jnp.float32)
        col_s = jnp.dot(ones, acc, preferred_element_type=jnp.float32)
        col_ss = jnp.dot(ones, acc * acc, preferred_element_type=jnp.float32)
        s = jnp.dot(col_s, sel_ref[...], preferred_element_type=jnp.float32)
        ss = jnp.dot(col_ss, sel_ref[...], preferred_element_type=jnp.float32)
        mean = s / m_total                               # (1, k_out)
        var = ss / m_total - mean * mean                 # biased variance
        scale = g_ref[...] * lax.rsqrt(var + EPS)        # (1, k_out)
        shift = be_ref[...] - mean * scale
        scale_l = jnp.dot(scale, selt_ref[...], preferred_element_type=jnp.float32)
        shift_l = jnp.dot(shift, selt_ref[...], preferred_element_type=jnp.float32)

        # --- normalize + ReLU in one elementwise pass ---
        return jnp.maximum(acc * scale_l + shift_l, 0.0)

    # ---------------- stage 1: Cin -> Cmid ----------------
    h1 = conv_bn_relu(x_ref, wt1_ref, g1_ref, be1_ref, sel1_ref, selt1_ref, Cmid)

    # Keep the activation in VMEM; rebuild the vertically padded slab in place.
    mid_ref[...] = jnp.zeros_like(mid_ref)
    for n in range(N):
        mid_ref[pl.ds(n * Hp + 1, H), :] = h1[n * H:(n + 1) * H, :]

    # ---------------- stage 2: Cmid -> Cout ----------------
    o_ref[...] = conv_bn_relu(mid_ref, wt2_ref, g2_ref, be2_ref,
                              sel2_ref, selt2_ref, Cout)


# ------------------------------ wrapper glue --------------------------------
def _toeplitz_weights(w_hwio, W):
    """(3, 3, C, K) HWIO weights -> (3, W*C, W*K) Toeplitz matrices so that
    `row_slab @ mat[kh]` does the width-wise 'same'-padded 3-tap conv for all
    W output positions at once (horizontal padding encoded as zero blocks)."""
    mats = []
    for kh in range(3):
        m = sum(jnp.kron(jnp.eye(W, k=1 - kw, dtype=w_hwio.dtype), w_hwio[kh, kw])
                for kw in range(3))
        mats.append(m)
    return jnp.stack(mats)


def _channel_fold_mats(W, K):
    eye = jnp.eye(K, dtype=jnp.float32)
    sel = jnp.tile(eye, (W, 1))    # (W*K, K): sums the W copies of each channel
    selt = jnp.tile(eye, (1, W))   # (K, W*K): broadcasts channel values to lanes
    return sel, selt


def double_conv(x_nchw, params):
    """Pallas DoubleConv forward. x_nchw: (N, Cin, H, W) -> (N, Cout, H, W)."""
    N, Cin, H, W = x_nchw.shape
    Cmid = params["w1"].shape[-1]
    Cout = params["w2"].shape[-1]
    Hp = H + 2

    # NCHW -> NHWC, pad H only (width padding lives in the Toeplitz weights),
    # flatten to a 2-D slab: rows = (n, h_padded), cols = (w, c).
    x = jnp.transpose(x_nchw, (0, 2, 3, 1))
    x = jnp.pad(x, ((0, 0), (1, 1), (0, 0), (0, 0)))
    x2d = x.reshape(N * Hp, W * Cin)

    wt1 = _toeplitz_weights(params["w1"], W)      # (3, W*Cin,  W*Cmid)
    wt2 = _toeplitz_weights(params["w2"], W)      # (3, W*Cmid, W*Cout)
    sel1, selt1 = _channel_fold_mats(W, Cmid)
    sel2, selt2 = _channel_fold_mats(W, Cout)
    # note: conv biases b1/b2 are intentionally NOT passed (no-op before BN).

    kernel = functools.partial(_double_conv_kernel, N=N, H=H, W=W,
                               Cmid=Cmid, Cout=Cout)

    def full(shape):
        nd = len(shape)
        return pl.BlockSpec(shape, lambda i, nd=nd: (0,) * nd)

    out2d = pl.pallas_call(
        kernel,
        out_shape=jax.ShapeDtypeStruct((N * H, W * Cout), jnp.float32),
        grid_spec=pltpu.PrefetchScalarGridSpec(
            num_scalar_prefetch=0,
            grid=(1,),
            in_specs=[full(x2d.shape), full(wt1.shape),
                      full(params["g1"].shape), full(params["be1"].shape),
                      full(sel1.shape), full(selt1.shape),
                      full(wt2.shape),
                      full(params["g2"].shape), full(params["be2"].shape),
                      full(sel2.shape), full(selt2.shape)],
            out_specs=full((N * H, W * Cout)),
            scratch_shapes=[pltpu.VMEM((N * Hp, W * Cmid), jnp.float32)],
        ),
        compiler_params=pltpu.CompilerParams(dimension_semantics=("arbitrary",)),
    )(x2d, wt1, params["g1"], params["be1"], sel1, selt1,
      wt2, params["g2"], params["be2"], sel2, selt2)

    y = out2d.reshape(N, H, W, Cout)              # lane-dense slab -> NHWC
    return jnp.transpose(y, (0, 3, 1, 2))         # NHWC -> NCHW


# ----------------------------- reference (pure JAX) -----------------------------
def _ref_stage(x, w, b, g, beta):
    y = lax.conv_general_dilated(
        x, w, window_strides=(1, 1), padding=((1, 1), (1, 1)),
        dimension_numbers=("NHWC", "HWIO", "NHWC")) + b.reshape(1, 1, 1, -1)
    mean = jnp.mean(y, axis=(0, 1, 2), keepdims=True)
    var = jnp.mean(jnp.square(y - mean), axis=(0, 1, 2), keepdims=True)
    yn = (y - mean) * lax.rsqrt(var + EPS) * g.reshape(1, 1, 1, -1) \
         + beta.reshape(1, 1, 1, -1)
    return jnp.maximum(yn, 0.0)


def ref_double_conv(x_nchw, params):
    x = jnp.transpose(x_nchw, (0, 2, 3, 1))
    h = _ref_stage(x, params["w1"], params["b1"], params["g1"], params["be1"])
    y = _ref_stage(h, params["w2"], params["b2"], params["g2"], params["be2"])
    return jnp.transpose(y, (0, 3, 1, 2))


# ---------------------------------- main -----------------------------------------
if __name__ == "__main__":
    N, Cin, H, W = 2, 4, 16, 16
    Cout = 8
    Cmid = Cout  # mid_channels defaults to out_channels

    key = jax.random.PRNGKey(0)
    ks = jax.random.split(key, 9)

    x = jax.random.normal(ks[0], (N, Cin, H, W), jnp.float32)

    params = {
        # conv weights stored as HWIO (3, 3, Cin, Cout)
        "w1": 0.2 * jax.random.normal(ks[1], (3, 3, Cin, Cmid), jnp.float32),
        "b1": 0.1 * jax.random.normal(ks[2], (1, Cmid), jnp.float32),
        "g1": 1.0 + 0.1 * jax.random.normal(ks[3], (1, Cmid), jnp.float32),
        "be1": 0.1 * jax.random.normal(ks[4], (1, Cmid), jnp.float32),
        "w2": 0.2 * jax.random.normal(ks[5], (3, 3, Cmid, Cout), jnp.float32),
        "b2": 0.1 * jax.random.normal(ks[6], (1, Cout), jnp.float32),
        "g2": 1.0 + 0.1 * jax.random.normal(ks[7], (1, Cout), jnp.float32),
        "be2": 0.1 * jax.random.normal(ks[8], (1, Cout), jnp.float32),
    }

    out = jax.block_until_ready(double_conv(x, params))
    ref = jax.block_until_ready(ref_double_conv(x, params))

    assert out.shape == (N, Cout, H, W), out.shape
    assert np.allclose(np.asarray(out), np.asarray(ref), rtol=2e-3, atol=2e-3), \
        "Pallas DoubleConv mismatch vs JAX reference"

    print("KERNEL_OK")
</pallas_src>

<mosaic_0001>
module attributes {stable_mosaic.version = 11 : i64} {
  func.func @_double_conv_kernel(%arg0: i32, %arg1: memref<36x64xf32, #tpu.memory_space<vmem>>, %arg2: memref<3x64x128xf32, #tpu.memory_space<vmem>>, %arg3: memref<1x8xf32, #tpu.memory_space<vmem>>, %arg4: memref<1x8xf32, #tpu.memory_space<vmem>>, %arg5: memref<128x8xf32, #tpu.memory_space<vmem>>, %arg6: memref<8x128xf32, #tpu.memory_space<vmem>>, %arg7: memref<3x128x128xf32, #tpu.memory_space<vmem>>, %arg8: memref<1x8xf32, #tpu.memory_space<vmem>>, %arg9: memref<1x8xf32, #tpu.memory_space<vmem>>, %arg10: memref<128x8xf32, #tpu.memory_space<vmem>>, %arg11: memref<8x128xf32, #tpu.memory_space<vmem>>, %arg12: memref<32x128xf32, #tpu.memory_space<vmem>>, %arg13: memref<36x128xf32, #tpu.memory_space<vmem>>) attributes {dimension_semantics = [#tpu.dimension_semantics<arbitrary>], iteration_bounds = array<i64: 1>, scalar_prefetch = 0 : i64, scratch_operands = 1 : i64, tpu.core_type = #tpu.core_type<tc>, window_params = [{pipeline_mode = #tpu.pipeline_mode<synchronous>, transform_indices = @transform_0, window_bounds = array<i64: 36, 64>}, {pipeline_mode = #tpu.pipeline_mode<synchronous>, transform_indices = @transform_1, window_bounds = array<i64: 3, 64, 128>}, {pipeline_mode = #tpu.pipeline_mode<synchronous>, transform_indices = @transform_2, window_bounds = array<i64: 1, 8>}, {pipeline_mode = #tpu.pipeline_mode<synchronous>, transform_indices = @transform_3, window_bounds = array<i64: 1, 8>}, {pipeline_mode = #tpu.pipeline_mode<synchronous>, transform_indices = @transform_4, window_bounds = array<i64: 128, 8>}, {pipeline_mode = #tpu.pipeline_mode<synchronous>, transform_indices = @transform_5, window_bounds = array<i64: 8, 128>}, {pipeline_mode = #tpu.pipeline_mode<synchronous>, transform_indices = @transform_6, window_bounds = array<i64: 3, 128, 128>}, {pipeline_mode = #tpu.pipeline_mode<synchronous>, transform_indices = @transform_7, window_bounds = array<i64: 1, 8>}, {pipeline_mode = #tpu.pipeline_mode<synchronous>, transform_indices = @transform_8, window_bounds = array<i64: 1, 8>}, {pipeline_mode = #tpu.pipeline_mode<synchronous>, transform_indices = @transform_9, window_bounds = array<i64: 128, 8>}, {pipeline_mode = #tpu.pipeline_mode<synchronous>, transform_indices = @transform_10, window_bounds = array<i64: 8, 128>}, {pipeline_mode = #tpu.pipeline_mode<synchronous>, transform_indices = @transform_11, window_bounds = array<i64: 32, 128>}]} {
    %c0 = arith.constant 0 : index
    %c0_0 = arith.constant 0 : index
    %0 = vector.load %arg1[%c0, %c0_0] : memref<36x64xf32, #tpu.memory_space<vmem>>, vector<16x64xf32>
    %c18 = arith.constant 18 : index
    %c0_1 = arith.constant 0 : index
    %1 = vector.load %arg1[%c18, %c0_1] : memref<36x64xf32, #tpu.memory_space<vmem>>, vector<16x64xf32>
    %2 = tpu.concatenate %0, %1 in 0 : vector<16x64xf32>, vector<16x64xf32> -> vector<32x64xf32>
    %c0_2 = arith.constant 0 : index
    %c0_3 = arith.constant 0 : index
    %c0_4 = arith.constant 0 : index
    %3 = vector.load %arg2[%c0_2, %c0_3, %c0_4] : memref<3x64x128xf32, #tpu.memory_space<vmem>>, vector<1x64x128xf32>
    %4 = vector.shape_cast %3 : vector<1x64x128xf32> to vector<64x128xf32>
    %cst = arith.constant dense<0.000000e+00> : vector<32x128xf32>
    %5 = tpu.matmul %2, %4, %cst {dimension_numbers = #tpu.dot_dimension_numbers<[1], [0], [0], [1], [0, 0, 1, 1], [], []>} : vector<32x64xf32>, vector<64x128xf32>, vector<32x128xf32> -> vector<32x128xf32>
    %c1 = arith.constant 1 : index
    %c0_5 = arith.constant 0 : index
    %6 = vector.load %arg1[%c1, %c0_5] : memref<36x64xf32, #tpu.memory_space<vmem>>, vector<16x64xf32>
    %c19 = arith.constant 19 : index
    %c0_6 = arith.constant 0 : index
    %7 = vector.load %arg1[%c19, %c0_6] : memref<36x64xf32, #tpu.memory_space<vmem>>, vector<16x64xf32>
    %8 = tpu.concatenate %6, %7 in 0 : vector<16x64xf32>, vector<16x64xf32> -> vector<32x64xf32>
    %c1_7 = arith.constant 1 : index
    %c0_8 = arith.constant 0 : index
    %c0_9 = arith.constant 0 : index
    %9 = vector.load %arg2[%c1_7, %c0_8, %c0_9] : memref<3x64x128xf32, #tpu.memory_space<vmem>>, vector<1x64x128xf32>
    %10 = vector.shape_cast %9 : vector<1x64x128xf32> to vector<64x128xf32>
    %cst_10 = arith.constant dense<0.000000e+00> : vector<32x128xf32>
    %11 = tpu.matmul %8, %10, %cst_10 {dimension_numbers = #tpu.dot_dimension_numbers<[1], [0], [0], [1], [0, 0, 1, 1], [], []>} : vector<32x64xf32>, vector<64x128xf32>, vector<32x128xf32> -> vector<32x128xf32>
    %12 = arith.addf %5, %11 : vector<32x128xf32>
    %c2 = arith.constant 2 : index
    %c0_11 = arith.constant 0 : index
    %13 = vector.load %arg1[%c2, %c0_11] : memref<36x64xf32, #tpu.memory_space<vmem>>, vector<16x64xf32>
    %c20 = arith.constant 20 : index
    %c0_12 = arith.constant 0 : index
    %14 = vector.load %arg1[%c20, %c0_12] : memref<36x64xf32, #tpu.memory_space<vmem>>, vector<16x64xf32>
    %15 = tpu.concatenate %13, %14 in 0 : vector<16x64xf32>, vector<16x64xf32> -> vector<32x64xf32>
    %c2_13 = arith.constant 2 : index
    %c0_14 = arith.constant 0 : index
    %c0_15 = arith.constant 0 : index
    %16 = vector.load %arg2[%c2_13, %c0_14, %c0_15] : memref<3x64x128xf32, #tpu.memory_space<vmem>>, vector<1x64x128xf32>
    %17 = vector.shape_cast %16 : vector<1x64x128xf32> to vector<64x128xf32>
    %cst_16 = arith.constant dense<0.000000e+00> : vector<32x128xf32>
    %18 = tpu.matmul %15, %17, %cst_16 {dimension_numbers = #tpu.dot_dimension_numbers<[1], [0], [0], [1], [0, 0, 1, 1], [], []>} : vector<32x64xf32>, vector<64x128xf32>, vector<32x128xf32> -> vector<32x128xf32>
    %19 = arith.addf %12, %18 : vector<32x128xf32>
    %cst_17 = arith.constant 1.000000e+00 : f32
    %20 = vector.broadcast %cst_17 : f32 to vector<1x32xf32>
    %cst_18 = arith.constant dense<0.000000e+00> : vector<1x128xf32>
    %21 = tpu.matmul %20, %19, %cst_18 {dimension_numbers = #tpu.dot_dimension_numbers<[1], [0], [0], [1], [0, 0, 1, 1], [], []>} : vector<1x32xf32>, vector<32x128xf32>, vector<1x128xf32> -> vector<1x128xf32>
    %22 = arith.mulf %19, %19 : vector<32x128xf32>
    %cst_19 = arith.constant dense<0.000000e+00> : vector<1x128xf32>
    %23 = tpu.matmul %20, %22, %cst_19 {dimension_numbers = #tpu.dot_dimension_numbers<[1], [0], [0], [1], [0, 0, 1, 1], [], []>} : vector<1x32xf32>, vector<32x128xf32>, vector<1x128xf32> -> vector<1x128xf32>
    %c0_20 = arith.constant 0 : index
    %c0_21 = arith.constant 0 : index
    %24 = vector.load %arg5[%c0_20, %c0_21] : memref<128x8xf32, #tpu.memory_space<vmem>>, vector<128x8xf32>
    %cst_22 = arith.constant dense<0.000000e+00> : vector<1x8xf32>
    %25 = tpu.matmul %21, %24, %cst_22 {dimension_numbers = #tpu.dot_dimension_numbers<[1], [0], [0], [1], [0, 0, 1, 1], [], []>} : vector<1x128xf32>, vector<128x8xf32>, vector<1x8xf32> -> vector<1x8xf32>
    %c0_23 = arith.constant 0 : index
    %c0_24 = arith.constant 0 : index
    %26 = vector.load %arg5[%c0_23, %c0_24] : memref<128x8xf32, #tpu.memory_space<vmem>>, vector<128x8xf32>
    %cst_25 = arith.constant dense<0.000000e+00> : vector<1x8xf32>
    %27 = tpu.matmul %23, %26, %cst_25 {dimension_numbers = #tpu.dot_dimension_numbers<[1], [0], [0], [1], [0, 0, 1, 1], [], []>} : vector<1x128xf32>, vector<128x8xf32>, vector<1x8xf32> -> vector<1x8xf32>
    %cst_26 = arith.constant 5.120000e+02 : f32
    %28 = vector.broadcast %cst_26 : f32 to vector<1x8xf32>
    %29 = arith.divf %25, %28 : vector<1x8xf32>
    %cst_27 = arith.constant 5.120000e+02 : f32
    %30 = vector.broadcast %cst_27 : f32 to vector<1x8xf32>
    %31 = arith.divf %27, %30 : vector<1x8xf32>
    %32 = arith.mulf %29, %29 : vector<1x8xf32>
    %33 = arith.subf %31, %32 : vector<1x8xf32>
    %c0_28 = arith.constant 0 : index
    %c0_29 = arith.constant 0 : index
    %34 = vector.load %arg3[%c0_28, %c0_29] : memref<1x8xf32, #tpu.memory_space<vmem>>, vector<1x8xf32>
    %cst_30 = arith.constant 9.99999974E-6 : f32
    %35 = vector.broadcast %cst_30 : f32 to vector<1x8xf32>
    %36 = arith.addf %33, %35 : vector<1x8xf32>
    %37 = math.rsqrt %36 : vector<1x8xf32>
    %38 = arith.mulf %34, %37 : vector<1x8xf32>
    %c0_31 = arith.constant 0 : index
    %c0_32 = arith.constant 0 : index
    %39 = vector.load %arg4[%c0_31, %c0_32] : memref<1x8xf32, #tpu.memory_space<vmem>>, vector<1x8xf32>
    %40 = arith.mulf %29, %38 : vector<1x8xf32>
    %41 = arith.subf %39, %40 : vector<1x8xf32>
    %c0_33 = arith.constant 0 : index
    %c0_34 = arith.constant 0 : index
    %42 = vector.load %arg6[%c0_33, %c0_34] : memref<8x128xf32, #tpu.memory_space<vmem>>, vector<8x128xf32>
    %cst_35 = arith.constant dense<0.000000e+00> : vector<1x128xf32>
    %43 = tpu.matmul %38, %42, %cst_35 {dimension_numbers = #tpu.dot_dimension_numbers<[1], [0], [0], [1], [0, 0, 1, 1], [], []>} : vector<1x8xf32>, vector<8x128xf32>, vector<1x128xf32> -> vector<1x128xf32>
    %c0_36 = arith.constant 0 : index
    %c0_37 = arith.constant 0 : index
    %44 = vector.load %arg6[%c0_36, %c0_37] : memref<8x128xf32, #tpu.memory_space<vmem>>, vector<8x128xf32>
    %cst_38 = arith.constant dense<0.000000e+00> : vector<1x128xf32>
    %45 = tpu.matmul %41, %44, %cst_38 {dimension_numbers = #tpu.dot_dimension_numbers<[1], [0], [0], [1], [0, 0, 1, 1], [], []>} : vector<1x8xf32>, vector<8x128xf32>, vector<1x128xf32> -> vector<1x128xf32>
    %46 = vector.broadcast %43 : vector<1x128xf32> to vector<32x128xf32>
    %47 = arith.mulf %19, %46 : vector<32x128xf32>
    %48 = vector.broadcast %45 : vector<1x128xf32> to vector<32x128xf32>
    %49 = arith.addf %47, %48 : vector<32x128xf32>
    %cst_39 = arith.constant 0.000000e+00 : f32
    %50 = vector.broadcast %cst_39 : f32 to vector<32x128xf32>
    %51 = arith.maximumf %49, %50 : vector<32x128xf32>
    %cst_40 = arith.constant 0.000000e+00 : f32
    %52 = vector.broadcast %cst_40 : f32 to vector<36x128xf32>
    %c0_41 = arith.constant 0 : index
    %c0_42 = arith.constant 0 : index
    %53 = vector.load %arg13[%c0_41, %c0_42] : memref<36x128xf32, #tpu.memory_space<vmem>>, vector<36x128xf32>
    tpu.vector_store %arg13[%c0_41, %c0_42], %52 {strides = array<i32>} : memref<36x128xf32, #tpu.memory_space<vmem>>, vector<36x128xf32>,
    %54 = vector.extract_strided_slice %51 {offsets = [0, 0], sizes = [16, 128], strides = [1, 1]} : vector<32x128xf32> to vector<16x128xf32>
    %c1_43 = arith.constant 1 : index
    %c0_44 = arith.constant 0 : index
    %55 = vector.load %arg13[%c1_43, %c0_44] : memref<36x128xf32, #tpu.memory_space<vmem>>, vector<16x128xf32>
    tpu.vector_store %arg13[%c1_43, %c0_44], %54 {strides = array<i32>} : memref<36x128xf32, #tpu.memory_space<vmem>>, vector<16x128xf32>,
    %56 = vector.extract_strided_slice %51 {offsets = [16, 0], sizes = [16, 128], strides = [1, 1]} : vector<32x128xf32> to vector<16x128xf32>
    %c19_45 = arith.constant 19 : index
    %c0_46 = arith.constant 0 : index
    %57 = vector.load %arg13[%c19_45, %c0_46] : memref<36x128xf32, #tpu.memory_space<vmem>>, vector<16x128xf32>
    tpu.vector_store %arg13[%c19_45, %c0_46], %56 {strides = array<i32>} : memref<36x128xf32, #tpu.memory_space<vmem>>, vector<16x128xf32>,
    %c0_47 = arith.constant 0 : index
    %c0_48 = arith.constant 0 : index
    %58 = vector.load %arg13[%c0_47, %c0_48] : memref<36x128xf32, #tpu.memory_space<vmem>>, vector<16x128xf32>
    %c18_49 = arith.constant 18 : index
    %c0_50 = arith.constant 0 : index
    %59 = vector.load %arg13[%c18_49, %c0_50] : memref<36x128xf32, #tpu.memory_space<vmem>>, vector<16x128xf32>
    %60 = tpu.concatenate %58, %59 in 0 : vector<16x128xf32>, vector<16x128xf32> -> vector<32x128xf32>
    %c0_51 = arith.constant 0 : index
    %c0_52 = arith.constant 0 : index
    %c0_53 = arith.constant 0 : index
    %61 = vector.load %arg7[%c0_51, %c0_52, %c0_53] : memref<3x128x128xf32, #tpu.memory_space<vmem>>, vector<1x128x128xf32>
    %62 = vector.shape_cast %61 : vector<1x128x128xf32> to vector<128x128xf32>
    %cst_54 = arith.constant dense<0.000000e+00> : vector<32x128xf32>
    %63 = tpu.matmul %60, %62, %cst_54 {dimension_numbers = #tpu.dot_dimension_numbers<[1], [0], [0], [1], [0, 0, 1, 1], [], []>} : vector<32x128xf32>, vector<128x128xf32>, vector<32x128xf32> -> vector<32x128xf32>
    %c1_55 = arith.constant 1 : index
    %c0_56 = arith.constant 0 : index
    %64 = vector.load %arg13[%c1_55, %c0_56] : memref<36x128xf32, #tpu.memory_space<vmem>>, vector<16x128xf32>
    %c19_57 = arith.constant 19 : index
    %c0_58 = arith.constant 0 : index
    %65 = vector.load %arg13[%c19_57, %c0_58] : memref<36x128xf32, #tpu.memory_space<vmem>>, vector<16x128xf32>
    %66 = tpu.concatenate %64, %65 in 0 : vector<16x128xf32>, vector<16x128xf32> -> vector<32x128xf32>
    %c1_59 = arith.constant 1 : index
    %c0_60 = arith.constant 0 : index
    %c0_61 = arith.constant 0 : index
    %67 = vector.load %arg7[%c1_59, %c0_60, %c0_61] : memref<3x128x128xf32, #tpu.memory_space<vmem>>, vector<1x128x128xf32>
    %68 = vector.shape_cast %67 : vector<1x128x128xf32> to vector<128x128xf32>
    %cst_62 = arith.constant dense<0.000000e+00> : vector<32x128xf32>
    %69 = tpu.matmul %66, %68, %cst_62 {dimension_numbers = #tpu.dot_dimension_numbers<[1], [0], [0], [1], [0, 0, 1, 1], [], []>} : vector<32x128xf32>, vector<128x128xf32>, vector<32x128xf32> -> vector<32x128xf32>
    %70 = arith.addf %63, %69 : vector<32x128xf32>
    %c2_63 = arith.constant 2 : index
    %c0_64 = arith.constant 0 : index
    %71 = vector.load %arg13[%c2_63, %c0_64] : memref<36x128xf32, #tpu.memory_space<vmem>>, vector<16x128xf32>
    %c20_65 = arith.constant 20 : index
    %c0_66 = arith.constant 0 : index
    %72 = vector.load %arg13[%c20_65, %c0_66] : memref<36x128xf32, #tpu.memory_space<vmem>>, vector<16x128xf32>
    %73 = tpu.concatenate %71, %72 in 0 : vector<16x128xf32>, vector<16x128xf32> -> vector<32x128xf32>
    %c2_67 = arith.constant 2 : index
    %c0_68 = arith.constant 0 : index
    %c0_69 = arith.constant 0 : index
    %74 = vector.load %arg7[%c2_67, %c0_68, %c0_69] : memref<3x128x128xf32, #tpu.memory_space<vmem>>, vector<1x128x128xf32>
    %75 = vector.shape_cast %74 : vector<1x128x128xf32> to vector<128x128xf32>
    %cst_70 = arith.constant dense<0.000000e+00> : vector<32x128xf32>
    %76 = tpu.matmul %73, %75, %cst_70 {dimension_numbers = #tpu.dot_dimension_numbers<[1], [0], [0], [1], [0, 0, 1, 1], [], []>} : vector<32x128xf32>, vector<128x128xf32>, vector<32x128xf32> -> vector<32x128xf32>
    %77 = arith.addf %70, %76 : vector<32x128xf32>
    %cst_71 = arith.constant 1.000000e+00 : f32
    %78 = vector.broadcast %cst_71 : f32 to vector<1x32xf32>
    %cst_72 = arith.constant dense<0.000000e+00> : vector<1x128xf32>
    %79 = tpu.matmul %78, %77, %cst_72 {dimension_numbers = #tpu.dot_dimension_numbers<[1], [0], [0], [1], [0, 0, 1, 1], [], []>} : vector<1x32xf32>, vector<32x128xf32>, vector<1x128xf32> -> vector<1x128xf32>
    %80 = arith.mulf %77, %77 : vector<32x128xf32>
    %cst_73 = arith.constant dense<0.000000e+00> : vector<1x128xf32>
    %81 = tpu.matmul %78, %80, %cst_73 {dimension_numbers = #tpu.dot_dimension_numbers<[1], [0], [0], [1], [0, 0, 1, 1], [], []>} : vector<1x32xf32>, vector<32x128xf32>, vector<1x128xf32> -> vector<1x128xf32>
    %c0_74 = arith.constant 0 : index
    %c0_75 = arith.constant 0 : index
    %82 = vector.load %arg10[%c0_74, %c0_75] : memref<128x8xf32, #tpu.memory_space<vmem>>, vector<128x8xf32>
    %cst_76 = arith.constant dense<0.000000e+00> : vector<1x8xf32>
    %83 = tpu.matmul %79, %82, %cst_76 {dimension_numbers = #tpu.dot_dimension_numbers<[1], [0], [0], [1], [0, 0, 1, 1], [], []>} : vector<1x128xf32>, vector<128x8xf32>, vector<1x8xf32> -> vector<1x8xf32>
    %c0_77 = arith.constant 0 : index
    %c0_78 = arith.constant 0 : index
    %84 = vector.load %arg10[%c0_77, %c0_78] : memref<128x8xf32, #tpu.memory_space<vmem>>, vector<128x8xf32>
    %cst_79 = arith.constant dense<0.000000e+00> : vector<1x8xf32>
    %85 = tpu.matmul %81, %84, %cst_79 {dimension_numbers = #tpu.dot_dimension_numbers<[1], [0], [0], [1], [0, 0, 1, 1], [], []>} : vector<1x128xf32>, vector<128x8xf32>, vector<1x8xf32> -> vector<1x8xf32>
    %cst_80 = arith.constant 5.120000e+02 : f32
    %86 = vector.broadcast %cst_80 : f32 to vector<1x8xf32>
    %87 = arith.divf %83, %86 : vector<1x8xf32>
    %cst_81 = arith.constant 5.120000e+02 : f32
    %88 = vector.broadcast %cst_81 : f32 to vector<1x8xf32>
    %89 = arith.divf %85, %88 : vector<1x8xf32>
    %90 = arith.mulf %87, %87 : vector<1x8xf32>
    %91 = arith.subf %89, %90 : vector<1x8xf32>
    %c0_82 = arith.constant 0 : index
    %c0_83 = arith.constant 0 : index
    %92 = vector.load %arg8[%c0_82, %c0_83] : memref<1x8xf32, #tpu.memory_space<vmem>>, vector<1x8xf32>
    %cst_84 = arith.constant 9.99999974E-6 : f32
    %93 = vector.broadcast %cst_84 : f32 to vector<1x8xf32>
    %94 = arith.addf %91, %93 : vector<1x8xf32>
    %95 = math.rsqrt %94 : vector<1x8xf32>
    %96 = arith.mulf %92, %95 : vector<1x8xf32>
    %c0_85 = arith.constant 0 : index
    %c0_86 = arith.constant 0 : index
    %97 = vector.load %arg9[%c0_85, %c0_86] : memref<1x8xf32, #tpu.memory_space<vmem>>, vector<1x8xf32>
    %98 = arith.mulf %87, %96 : vector<1x8xf32>
    %99 = arith.subf %97, %98 : vector<1x8xf32>
    %c0_87 = arith.constant 0 : index
    %c0_88 = arith.constant 0 : index
    %100 = vector.load %arg11[%c0_87, %c0_88] : memref<8x128xf32, #tpu.memory_space<vmem>>, vector<8x128xf32>
    %cst_89 = arith.constant dense<0.000000e+00> : vector<1x128xf32>
    %101 = tpu.matmul %96, %100, %cst_89 {dimension_numbers = #tpu.dot_dimension_numbers<[1], [0], [0], [1], [0, 0, 1, 1], [], []>} : vector<1x8xf32>, vector<8x128xf32>, vector<1x128xf32> -> vector<1x128xf32>
    %c0_90 = arith.constant 0 : index
    %c0_91 = arith.constant 0 : index
    %102 = vector.load %arg11[%c0_90, %c0_91] : memref<8x128xf32, #tpu.memory_space<vmem>>, vector<8x128xf32>
    %cst_92 = arith.constant dense<0.000000e+00> : vector<1x128xf32>
    %103 = tpu.matmul %99, %102, %cst_92 {dimension_numbers = #tpu.dot_dimension_numbers<[1], [0], [0], [1], [0, 0, 1, 1], [], []>} : vector<1x8xf32>, vector<8x128xf32>, vector<1x128xf32> -> vector<1x128xf32>
    %104 = vector.broadcast %101 : vector<1x128xf32> to vector<32x128xf32>
    %105 = arith.mulf %77, %104 : vector<32x128xf32>
    %106 = vector.broadcast %103 : vector<1x128xf32> to vector<32x128xf32>
    %107 = arith.addf %105, %106 : vector<32x128xf32>
    %cst_93 = arith.constant 0.000000e+00 : f32
    %108 = vector.broadcast %cst_93 : f32 to vector<32x128xf32>
    %109 = arith.maximumf %107, %108 : vector<32x128xf32>
    %c0_94 = arith.constant 0 : index
    %c0_95 = arith.constant 0 : index
    %110 = vector.load %arg12[%c0_94, %c0_95] : memref<32x128xf32, #tpu.memory_space<vmem>>, vector<32x128xf32>
    tpu.vector_store %arg12[%c0_94, %c0_95], %109 {strides = array<i32>} : memref<32x128xf32, #tpu.memory_space<vmem>>, vector<32x128xf32>,
    return
  }
  func.func @transform_0(%arg0: i32) -> (i32, i32) {
    %c0_i32 = arith.constant 0 : i32
    %c0_i32_0 = arith.constant 0 : i32
    %c0_i32_1 = arith.constant 0 : i32
    return %c0_i32, %c0_i32_0 : i32, i32
  }
  func.func @transform_1(%arg0: i32) -> (i32, i32, i32) {
    %c0_i32 = arith.constant 0 : i32
    %c0_i32_0 = arith.constant 0 : i32
    %c0_i32_1 = arith.constant 0 : i32
    %c0_i32_2 = arith.constant 0 : i32
    return %c0_i32, %c0_i32_0, %c0_i32_1 : i32, i32, i32
  }
  func.func @transform_2(%arg0: i32) -> (i32, i32) {
    %c0_i32 = arith.constant 0 : i32
    %c0_i32_0 = arith.constant 0 : i32
    %c0_i32_1 = arith.constant 0 : i32
    return %c0_i32, %c0_i32_0 : i32, i32
  }
  func.func @transform_3(%arg0: i32) -> (i32, i32) {
    %c0_i32 = arith.constant 0 : i32
    %c0_i32_0 = arith.constant 0 : i32
    %c0_i32_1 = arith.constant 0 : i32
    return %c0_i32, %c0_i32_0 : i32, i32
  }
  func.func @transform_4(%arg0: i32) -> (i32, i32) {
    %c0_i32 = arith.constant 0 : i32
    %c0_i32_0 = arith.constant 0 : i32
    %c0_i32_1 = arith.constant 0 : i32
    return %c0_i32, %c0_i32_0 : i32, i32
  }
  func.func @transform_5(%arg0: i32) -> (i32, i32) {
    %c0_i32 = arith.constant 0 : i32
    %c0_i32_0 = arith.constant 0 : i32
    %c0_i32_1 = arith.constant 0 : i32
    return %c0_i32, %c0_i32_0 : i32, i32
  }
  func.func @transform_6(%arg0: i32) -> (i32, i32, i32) {
    %c0_i32 = arith.constant 0 : i32
    %c0_i32_0 = arith.constant 0 : i32
    %c0_i32_1 = arith.constant 0 : i32
    %c0_i32_2 = arith.constant 0 : i32
    return %c0_i32, %c0_i32_0, %c0_i32_1 : i32, i32, i32
  }
  func.func @transform_7(%arg0: i32) -> (i32, i32) {
    %c0_i32 = arith.constant 0 : i32
    %c0_i32_0 = arith.constant 0 : i32
    %c0_i32_1 = arith.constant 0 : i32
    return %c0_i32, %c0_i32_0 : i32, i32
  }
  func.func @transform_8(%arg0: i32) -> (i32, i32) {
    %c0_i32 = arith.constant 0 : i32
    %c0_i32_0 = arith.constant 0 : i32
    %c0_i32_1 = arith.constant 0 : i32
    return %c0_i32, %c0_i32_0 : i32, i32
  }
  func.func @transform_9(%arg0: i32) -> (i32, i32) {
    %c0_i32 = arith.constant 0 : i32
    %c0_i32_0 = arith.constant 0 : i32
    %c0_i32_1 = arith.constant 0 : i32
    return %c0_i32, %c0_i32_0 : i32, i32
  }
  func.func @transform_10(%arg0: i32) -> (i32, i32) {
    %c0_i32 = arith.constant 0 : i32
    %c0_i32_0 = arith.constant 0 : i32
    %c0_i32_1 = arith.constant 0 : i32
    return %c0_i32, %c0_i32_0 : i32, i32
  }
  func.func @transform_11(%arg0: i32) -> (i32, i32) {
    %c0_i32 = arith.constant 0 : i32
    %c0_i32_0 = arith.constant 0 : i32
    %c0_i32_1 = arith.constant 0 : i32
    return %c0_i32, %c0_i32_0 : i32, i32
  }
}

</mosaic_0001>

<bundles_post_ra>
// kernel: tpu_custom_call.1
= control target key start
LH: loop header
LB: loop body
LE: loop exit
PB: predicated region body
PF: predicated region fallthrough
CT: control target
= control target key end

     0   :  { %16 = vsyncpa [#allocation4], 0  ;;  %s2979_s0 = inlined_call_operand.vmem [shape: f32[36,64], index: 0, kind: input, shape index: {}]   ;;  %s2980_s1 = inlined_call_operand.vmem [shape: f32[3,64,128], index: 1, kind: input, shape index: {}]   ;;  %s2981_s2 = inlined_call_operand.vmem [shape: f32[1,8], index: 2, kind: input, shape index: {}]   ;;  %s2982_s3 = inlined_call_operand.vmem [shape: f32[1,8], index: 3, kind: input, shape index: {}]   ;;  %s2983_s4 = inlined_call_operand.vmem [shape: f32[128,8], index: 4, kind: input, shape index: {}]   ;;  %s2984_s5 = inlined_call_operand.vmem [shape: f32[8,128], index: 5, kind: input, shape index: {}]   ;;  %s2985_s6 = inlined_call_operand.hbm [shape: f32[3,128,128], index: 6, kind: input, shape index: {}]   ;;  %s2986_s7 = inlined_call_operand.vmem [shape: f32[1,8], index: 7, kind: input, shape index: {}]   ;;  %s2987_s8 = inlined_call_operand.vmem [shape: f32[1,8], index: 8, kind: input, shape index: {}]   ;;  %s2988_s9 = inlined_call_operand.vmem [shape: f32[128,8], index: 9, kind: input, shape index: {}]   ;;  %s2989_s10 = inlined_call_operand.vmem [shape: f32[8,128], index: 10, kind: input, shape index: {}]   ;;  %s2990_s11 = inlined_call_operand.hbm [shape: f32[32,128], index: 11, kind: output, shape index: {}]  }
   0x1   :  { %17 = vsyncpa [#allocation5], 0  ;;  %s2367_s17 = smov [#allocation3]  }
   0x2   :  { %s35_s18 = sshll.u32 %s2367_s17, 4  ;;  %s36_s18 = int_to_ptr.vmem [resolvable:$true] %s35_s18 }
   0x3   :  { %s2331_s19 = scalar_lea.vmem %s36_s18, 6144  ;;  %p2336_p1 = scmp.lt.s32.totalorder %s36_s18, %s36_s18 }
   0x4   :  { %p2332_p0 = scmp.ne.s32.totalorder %s36_s18, %s2331_s19  ;;  %p2337_p2 = scmp.lt.s32.totalorder %s2331_s19, %s2331_s19 }
   0x6   :  { %p2338_p3 = por %p2337_p2, %p2336_p1 }
   0x8   :  { %p2339_p4 = pnand %p2338_p3, %p2332_p0 }
   0xa   :  { %2342 = shalt.err (!%p2339_p4)
}
   0xb   :  { %s2368_s20 = smov 128   ;;  %s2369_s21 = smov 8  }
   0xc   :  { %41 = dma.hbm_to_vmem [thread:$0]  %s2985_s6, 6144, %s36_s18, [#allocation4], %s2368_s20, %s2368_s20, %s2369_s21  }
   0xd   :  { %2363 = dma.done.wait [#allocation4], 6144  }
   0xe   :  { %2364 = vsyncadd [#allocation4], 4294961152  ;;  %v1707_v0 = vld [vmem:[%s2980_s1 + $0x78] sm:$0xff]  ;;  %v1706_v2 = vld [vmem:[%s2980_s1 + $0x70] sm:$0xff]  ;;  %vm78_vm0 = vcmask 523264   ;;  %v2370_v36 = vmov 0.0  }
   0xf   :  { %v64_v1 = vld [vmem:[%s2980_s1 + $0x38] sm:$0xff]  ;;  %1928 = vmatprep.subr.mxu0 %v1707_v0  ;;  %v63_v3 = vld [vmem:[%s2980_s1 + $0x30] sm:$0xff]  ;;  %v1705_v4 = vld [vmem:[%s2980_s1 + $0x68] sm:$0xff]  ;;  %871 = vst [vmem:[#allocation2] sm:$0xff] %v2370_v36  ;;  %vm2371_vm1 = vmmov 0   ;;  %vm387_vm2 = vcmask 261120  }
  0x10   :  { %1950 = vmatprep.subr.mxu1 %v64_v1  ;;  %1929 = vmatpush3.msra.mxu0 %v1707_v0  ;;  %v62_v5 = vld [vmem:[%s2980_s1 + $0x28] sm:$0xff]  ;;  %v1704_v6 = vld [vmem:[%s2980_s1 + $0x60] sm:$0xff]  ;;  %v1703_v8 = vld [vmem:[%s2980_s1 + $0x58] sm:$0xff]  ;;  %872 = vst [vmem:[#allocation2 + $0x8] sm:$0xff] %v2370_v36  ;;  %vm704_vm3 = vcmask 64512  }
  0x11   :  { %1951 = vmatpush3.msra.mxu1 %v64_v1  ;;  %1930 = vmatprep.subr.mxu0 %v1706_v2  ;;  %v61_v7 = vld [vmem:[%s2980_s1 + $0x20] sm:$0xff]  ;;  %v60_v9 = vld [vmem:[%s2980_s1 + $0x18] sm:$0xff]  ;;  %v1702_v10 = vld [vmem:[%s2980_s1 + $0x50] sm:$0xff]  ;;  %873 = vst [vmem:[#allocation2 + $0x10] sm:$0xff] %v2370_v36 }
  0x12   :  { %1952 = vmatprep.subr.mxu1 %v63_v3  ;;  %1931 = vmatpush3.msra.mxu0 %v1706_v2  ;;  %v59_v11 = vld [vmem:[%s2980_s1 + $0x10] sm:$0xff]  ;;  %v1701_v12 = vld [vmem:[%s2980_s1 + $0x48] sm:$0xff]  ;;  %v1700_v14 = vld [vmem:[%s2980_s1 + $0x40] sm:$0xff]  ;;  %874 = vst [vmem:[#allocation2 + $0x18] sm:$0xff] %v2370_v36 }
  0x13   :  { %1953 = vmatpush3.msra.mxu1 %v63_v3  ;;  %1932 = vmatprep.subr.mxu0 %v1705_v4  ;;  %v58_v13 = vld [vmem:[%s2980_s1 + $0x8] sm:$0xff]  ;;  %v57_v15 = vld [vmem:[%s2980_s1] sm:$0xff]  ;;  %v1723_v20 = vld [vmem:[%s2980_s1 + $0xb8] sm:$0xff]  ;;  %875 = vst [vmem:[#allocation2 + $0x20] sm:$0xf] %v2370_v36 }
  0x14   :  { %1954 = vmatprep.subr.mxu1 %v62_v5  ;;  %1933 = vmatpush3.msra.mxu0 %v1705_v4  ;;  %v65_v16 = vld [vmem:[%s2979_s0 + $0x1] sm:$0xff]  ;;  %v66_v18 = vld [vmem:[%s2979_s0 + $0x9] sm:$0xff]  ;;  %v67_v21 = vld [vmem:[%s2979_s0 + $0x13] sm:$0xff] }
  0x15   :  { %1955 = vmatpush3.msra.mxu1 %v62_v5  ;;  %1934 = vmatprep.subr.mxu0 %v1704_v6  ;;  %v53_v17 = vld [vmem:[%s2979_s0] sm:$0xff]  ;;  %v54_v19 = vld [vmem:[%s2979_s0 + $0x8] sm:$0xff]  ;;  %v55_v22 = vld [vmem:[%s2979_s0 + $0x12] sm:$0xff] }
  0x16   :  { %1956 = vmatprep.subr.mxu1 %v61_v7  ;;  %1935 = vmatpush3.msra.mxu0 %v1704_v6  ;;  %v1722_v23 = vld [vmem:[%s2980_s1 + $0xb0] sm:$0xff]  ;;  %v56_v24 = vld [vmem:[%s2979_s0 + $0x1a] sm:$0xff]  ;;  %v1721_v25 = vld [vmem:[%s2980_s1 + $0xa8] sm:$0xff] }
  0x17   :  { %1957 = vmatpush3.msra.mxu1 %v61_v7  ;;  %1936 = vmatprep.subr.mxu0 %v1703_v8  ;;  %v68_v26 = vld [vmem:[%s2979_s0 + $0x1b] sm:$0xff]  ;;  %v1718_v30 = vld [vmem:[%s2980_s1 + $0x90] sm:$0xff]  ;;  %v1717_v31 = vld [vmem:[%s2980_s1 + $0x88] sm:$0xff] }
  0x18   :  { %1958 = vmatprep.subr.mxu1 %v60_v9  ;;  %1937 = vmatpush3.msra.mxu0 %v1703_v8  ;;  %v273_v27 = vld [vmem:[%s2979_s0 + $0x2] sm:$0xff]  ;;  %v1719_v29 = vld [vmem:[%s2980_s1 + $0x98] sm:$0xff]  ;;  %v274_v33 = vld [vmem:[%s2979_s0 + $0xa] sm:$0xff] }
  0x19   :  { %1959 = vmatpush3.msra.mxu1 %v60_v9  ;;  %1938 = vmatprep.subr.mxu0 %v1702_v10  ;;  %v1720_v28 = vld [vmem:[%s2980_s1 + $0xa0] sm:$0xff]  ;;  %v275_v34 = vld [vmem:[%s2979_s0 + $0x14] sm:$0xff]  ;;  %v2586_v39 = vld [vmem:[%s2983_s4 + $0x68] sm:$0xff]  ;;  %v2372_v9 = vmov 1.0  }
  0x1a   :  { %1960 = vmatprep.subr.mxu1 %v59_v11  ;;  %1939 = vmatpush3.msra.mxu0 %v1702_v10  ;;  %v1716_v32 = vld [vmem:[%s2980_s1 + $0x80] sm:$0xff]  ;;  %v2574_v37 = vld [vmem:[%s2983_s4 + $0x78] sm:$0xff]  ;;  %v2579_v38 = vld [vmem:[%s2983_s4 + $0x70] sm:$0xff] }
  0x1b   :  { %1961 = vmatpush3.msra.mxu1 %v59_v11  ;;  %1940 = vmatprep.subr.mxu0 %v1701_v12  ;;  %v276_v35 = vld [vmem:[%s2979_s0 + $0x1c] sm:$0xff]  ;;  %v2607_v42 = vld [vmem:[%s2983_s4 + $0x50] sm:$0xff]  ;;  %v2614_v43 = vld [vmem:[%s2983_s4 + $0x48] sm:$0xff] }
  0x1c   :  { %1962 = vmatprep.subr.mxu1 %v58_v13  ;;  %1941 = vmatpush3.msra.mxu0 %v1701_v12  ;;  %v2593_v40 = vld [vmem:[%s2983_s4 + $0x60] sm:$0xff]  ;;  %v2600_v41 = vld [vmem:[%s2983_s4 + $0x58] sm:$0xff]  ;;  %v2635_v46 = vld [vmem:[%s2983_s4 + $0x30] sm:$0xff] }
  0x1d   :  { %1963 = vmatpush3.msra.mxu1 %v58_v13  ;;  %1942 = vmatprep.subr.mxu0 %v1700_v14  ;;  %v2621_v44 = vld [vmem:[%s2983_s4 + $0x40] sm:$0xff]  ;;  %v2628_v45 = vld [vmem:[%s2983_s4 + $0x38] sm:$0xff]  ;;  %v2642_v47 = vld [vmem:[%s2983_s4 + $0x28] sm:$0xff] }
  0x1e   :  { %1964 = vmatprep.subr.mxu1 %v57_v15  ;;  %1943 = vmatpush3.msra.mxu0 %v1700_v14  ;;  %v2649_v48 = vld [vmem:[%s2983_s4 + $0x20] sm:$0xff]  ;;  %v2656_v49 = vld [vmem:[%s2983_s4 + $0x18] sm:$0xff]  ;;  %v2663_v50 = vld [vmem:[%s2983_s4 + $0x10] sm:$0xff] }
  0x1f   :  { %1944 = vmatprep.mubr.msk.f32.mxu0 %vm78_vm0, %v65_v16  ;;  %1965 = vmatpush3.msra.mxu1 %v57_v15  ;;  %v2670_v51 = vld [vmem:[%s2983_s4 + $0x8] sm:$0xff]  ;;  %v535_v13 = vld [vmem:[%s2983_s4] sm:$0xff] }
  0x20   :  { %1966 = vmatprep.mubr.msk.f32.mxu1 %vm78_vm0, %v53_v17  ;;  %1945 = vmatmul.mubr.msk.f32.vlgmr.msra.gmra.mxu0 %vm78_vm0, %v66_v18  ;;  %v703_v18 = vld [vmem:[%s2984_s5] sm:$0xff] }
  0x21   :  { %1967 = vmatmul.mubr.msk.f32.vlgmr.msra.gmra.mxu1 %vm78_vm0, %v54_v19  ;;  %1972 = vmatprep.subr.mxu0 %v1723_v20  ;;  %v920_v19 = vld [vmem:[#allocation3 + $0xf8] sm:$0xff] }
  0x22   :  { %1947 = vmatprep.mubr.msk.f32.mxu0 %vm78_vm0, %v67_v21  ;;  %1973 = vmatpush3.msra.mxu0 %v1723_v20  ;;  %v919_v20 = vld [vmem:[#allocation3 + $0xf0] sm:$0xff]  ;;  %v918_v21 = vld [vmem:[#allocation3 + $0xe8] sm:$0xff] }
  0x23   :  { %1969 = vmatprep.mubr.msk.f32.mxu1 %vm78_vm0, %v55_v22  ;;  %1974 = vmatprep.subr.mxu0 %v1722_v23  ;;  %v917_v22 = vld [vmem:[#allocation3 + $0xe0] sm:$0xff] }
  0x24   :  { %1975 = vmatpush3.msra.mxu0 %v1722_v23  ;;  %1994 = vmatprep.subr.mxu1 %v2370_v36  ;;  %v916_v23 = vld [vmem:[#allocation3 + $0xd8] sm:$0xff] }
  0x25   :  { %1970 = vmatmul.mubr.msk.f32.gmra.mxu1 %vm78_vm0, %v56_v24  ;;  %1976 = vmatprep.subr.mxu0 %v1721_v25  ;;  %v915_v24 = vld [vmem:[#allocation3 + $0xd0] sm:$0xff] }
  0x26   :  { %1948 = vmatmul.mubr.msk.f32.gmra.mxu0 %vm78_vm0, %v68_v26  ;;  %2002 = vmatprep.mubr.msk.f32.mxu1 %vm2371_vm1, %v2370_v36 }
  0x27   :  { %1977 = vmatpush3.msra.mxu0 %v1721_v25  ;;  %1988 = vmatprep.mubr.msk.f32.mxu0 %vm78_vm0, %v273_v27  ;;  %v914_v25 = vld [vmem:[#allocation3 + $0xc8] sm:$0xff] }
  0x28   :  { %1978 = vmatprep.subr.mxu0 %v1720_v28 }
  0x29   :  { %1979 = vmatpush3.msra.mxu0 %v1720_v28 }
  0x2a   :  { %1980 = vmatprep.subr.mxu0 %v1719_v29 }
  0x2b   :  { %1981 = vmatpush3.msra.mxu0 %v1719_v29 }
  0x2c   :  { %1982 = vmatprep.subr.mxu0 %v1718_v30 }
  0x2d   :  { %1983 = vmatpush3.msra.mxu0 %v1718_v30 }
  0x2e   :  { %1984 = vmatprep.subr.mxu0 %v1717_v31 }
  0x2f   :  { %1985 = vmatpush3.msra.mxu0 %v1717_v31 }
  0x30   :  { %1986 = vmatprep.subr.mxu0 %v1716_v32 }
  0x31   :  { %1987 = vmatpush3.msra.mxu0 %v1716_v32 }
  0x32   :  { %1989 = vmatmul.mubr.msk.f32.vlgmr.msra.gmra.mxu0 %vm78_vm0, %v274_v33  ;;  %2016 = vmatprep.subr.mxu0 %v2370_v36 }
  0x33   :  { %1991 = vmatprep.mubr.msk.f32.mxu0 %vm78_vm0, %v275_v34  ;;  %2017 = vmatpush3.msra.mxu0 %v2574_v37 }
  0x34   :  { %2018 = vmatprep.subr.mxu0 %v2370_v36 }
  0x35   :  { %2019 = vmatpush3.msra.mxu0 %v2579_v38 }
  0x36   :  { %1992 = vmatmul.mubr.msk.f32.gmra.mxu0 %vm78_vm0, %v276_v35  ;;  %2020 = vmatprep.subr.mxu0 %v2370_v36  ;;  %v696_v35 = vld [vmem:[%s2981_s2] sm:$0x1] }
  0x37   :  { %2048 = vmatprep.mubr.msk.f32.mxu0 %vm2371_vm1, %v2370_v36  ;;  %2021 = vmatpush3.msra.mxu0 %v2586_v39 }
  0x38   :  { %2022 = vmatprep.subr.mxu0 %v2370_v36 }
  0x39   :  { %2023 = vmatpush3.msra.mxu0 %v2593_v40 }
  0x3a   :  { %2024 = vmatprep.subr.mxu0 %v2370_v36 }
  0x3b   :  { %2025 = vmatpush3.msra.mxu0 %v2600_v41 }
  0x3c   :  { %2026 = vmatprep.subr.mxu0 %v2370_v36 }
  0x3d   :  { %2027 = vmatpush3.msra.mxu0 %v2607_v42 }
  0x3e   :  { %2028 = vmatprep.subr.mxu0 %v2370_v36 }
  0x3f   :  { %2029 = vmatpush3.msra.mxu0 %v2614_v43 }
  0x40   :  { %2030 = vmatprep.subr.mxu0 %v2370_v36 }
  0x41   :  { %2031 = vmatpush3.msra.mxu0 %v2621_v44 }
  0x42   :  { %2032 = vmatprep.subr.mxu0 %v2370_v36 }
  0x43   :  { %2033 = vmatpush3.msra.mxu0 %v2628_v45 }
  0x44   :  { %2034 = vmatprep.subr.mxu0 %v2370_v36 }
  0x45   :  { %2035 = vmatpush3.msra.mxu0 %v2635_v46 }
  0x46   :  { %2036 = vmatprep.subr.mxu0 %v2370_v36 }
  0x47   :  { %2037 = vmatpush3.msra.mxu0 %v2642_v47 }
  0x48   :  { %2038 = vmatprep.subr.mxu0 %v2370_v36 }
  0x49   :  { %2039 = vmatpush3.msra.mxu0 %v2649_v48 }
  0x4a   :  { %2040 = vmatprep.subr.mxu0 %v2370_v36 }
  0x4b   :  { %2041 = vmatpush3.msra.mxu0 %v2656_v49 }
  0x4c   :  { %2042 = vmatprep.subr.mxu0 %v2370_v36 }
  0x4d   :  { %2043 = vmatpush3.msra.mxu0 %v2663_v50 }
  0x4e   :  { %2044 = vmatprep.subr.mxu0 %v2370_v36 }
  0x4f   :  { %2045 = vmatpush3.msra.mxu0 %v2670_v51 }
  0x50   :  { %2046 = vmatprep.subr.mxu0 %v2370_v36 }
  0x51   :  { %2047 = vmatpush3.msra.mxu0 %v535_v13 }
  0x52   :  { %2096 = vmatprep.subr.mxu0 %v920_v19 }
  0xe0   :  { %v1946_v52 = vpop.f32.mrf.mxu0 }
  0xe1   :  { %v1968_v53 = vpop.f32.mrf.mxu1 }
  0xe2   :  { %v157_v54 = vpop.f32.mrf.mxu0  ;;  %v260_v3 = vadd.f32 %v1968_v53, %v1946_v52  ;;  %v893_v52 = vld [vmem:[#allocation3 + $0x48] sm:$0xff]  ;;  %v909_v53 = vld [vmem:[#allocation3 + $0xa0] sm:$0xff] }
  0xe3   :  { %v254_v56 = vpop.f32.mrf.mxu1 }
  0xe4   :  { %v255_v5 = vadd.f32 %v254_v56, %v157_v54  ;;  %v892_v54 = vld [vmem:[#allocation3 + $0x40] sm:$0xff]  ;;  %v891_v56 = vld [vmem:[#allocation3 + $0x38] sm:$0xff] }
  0xe5   :  { %v1971_v57 = vpop.f32.mrf.mxu1 }
  0xe6   :  { %v1949_v55 = vpop.f32.mrf.mxu0 }
  0xe7   :  { %v264_v60 = vpop.f32.mrf.mxu1  ;;  %v270_v62 = vadd.f32 %v1971_v57, %v1949_v55  ;;  %v908_v55 = vld [vmem:[#allocation3 + $0x98] sm:$0xff]  ;;  %v907_v57 = vld [vmem:[#allocation3 + $0x90] sm:$0xff] }
  0xe8   :  { %v167_v58 = vpop.f32.mrf.mxu0 }
  0xe9   :  { %v265_v0 = vadd.f32 %v264_v60, %v167_v58  ;;  %v890_v58 = vld [vmem:[#allocation3 + $0x30] sm:$0xff]  ;;  %v889_v60 = vld [vmem:[#allocation3 + $0x28] sm:$0xff] }
  0xf2   :  { %v1990_v59 = vpop.f32.mrf.mxu0 }
  0xf3   :  { %v2682_v6 = vadd.f32 %v1990_v59, %v260_v3  ;;  %v906_v59 = vld [vmem:[#allocation3 + $0x88] sm:$0xff] }
  0xf4   :  { %v364_v61 = vpop.f32.mrf.mxu0  ;;  %v885_v3 = vld [vmem:[#allocation3 + $0x8] sm:$0xff] }
  0xf5   :  { %v2686_v7 = vadd.f32 %v364_v61, %v255_v5  ;;  %v462_v11 = vmul.f32 %v2682_v6, %v2682_v6  ;;  %v905_v61 = vld [vmem:[#allocation3 + $0x80] sm:$0xff] }
  0xf6   :  { %v1993_v63 = vpop.f32.mrf.mxu0  ;;  %v884_v5 = vld [vmem:[#allocation3] sm:$0xff] }
  0xf7   :  { %v2676_v1 = vadd.f32 %v1993_v63, %v270_v62  ;;  %v461_v12 = vmul.f32 %v2686_v7, %v2686_v7  ;;  %v888_v62 = vld [vmem:[#allocation3 + $0x20] sm:$0xff]  ;;  %v1111_v63 = vld [vmem:[#allocation3 + $0x178] sm:$0xff] }
  0xf8   :  { %v374_v2 = vpop.f32.mrf.mxu0 }
  0xf9   :  { %v2678_v4 = vadd.f32 %v374_v2, %v265_v0  ;;  %1995 = vmatpush3.msra.mxu1 %v2676_v1  ;;  %v464_v8 = vmul.f32 %v2676_v1, %v2676_v1  ;;  %v887_v0 = vld [vmem:[#allocation3 + $0x18] sm:$0xff]  ;;  %v886_v2 = vld [vmem:[#allocation3 + $0x10] sm:$0xff] }
  0xfa   :  { %1996 = vmatprep.subr.mxu1 %v2370_v36 }
  0xfb   :  { %1997 = vmatpush3.msra.mxu1 %v2678_v4  ;;  %v463_v10 = vmul.f32 %v2678_v4, %v2678_v4 }
  0xfc   :  { %1998 = vmatprep.subr.mxu1 %v2370_v36 }
  0xfd   :  { %1999 = vmatpush3.msra.mxu1 %v2682_v6 }
  0xfe   :  { %2000 = vmatprep.subr.mxu1 %v2370_v36 }
  0xff   :  { %2001 = vmatpush3.msra.mxu1 %v2686_v7 }
 0x100   :  { %2003 = vmatmul.mubr.msk.f32.vlgmr.msra.gmra.mxu1 %vm387_vm2, %v2372_v9  ;;  %2005 = vmatprep.subr.mxu1 %v2370_v36 }
 0x101   :  { %2006 = vmatpush3.msra.mxu1 %v464_v8  ;;  %2013 = vmatprep.mubr.msk.f32.mxu1 %vm2371_vm1, %v2370_v36  ;;  %v851_v8 = vlaneseq }
 0x102   :  { %2007 = vmatprep.subr.mxu1 %v2370_v36 }
 0x103   :  { %2008 = vmatpush3.msra.mxu1 %v463_v10  ;;  %v852_v10 = vshrl.u32 %v851_v8, 7 }
 0x104   :  { %2009 = vmatprep.subr.mxu1 %v2370_v36 }
 0x105   :  { %2010 = vmatpush3.msra.mxu1 %v462_v11  ;;  %v2763_v11 = vsub.s32 0, %v852_v10 }
 0x106   :  { %2011 = vmatprep.subr.mxu1 %v2370_v36 }
 0x107   :  { %2012 = vmatpush3.msra.mxu1 %v461_v12 }
 0x108   :  { %2014 = vmatmul.mubr.msk.f32.vlgmr.msra.gmra.mxu1 %vm387_vm2, %v2372_v9  ;;  %2051 = vmatprep.subr.mxu1 %v2370_v36 }
 0x109   :  { %2052 = vmatpush3.msra.mxu1 %v2574_v37  ;;  %2083 = vmatprep.mubr.msk.f32.mxu1 %vm2371_vm1, %v2370_v36 }
 0x10a   :  { %2053 = vmatprep.subr.mxu1 %v2370_v36 }
 0x10b   :  { %2054 = vmatpush3.msra.mxu1 %v2579_v38 }
 0x10c   :  { %2055 = vmatprep.subr.mxu1 %v2370_v36 }
 0x10d   :  { %2056 = vmatpush3.msra.mxu1 %v2586_v39  ;;  %v700_v39 = vld [vmem:[%s2982_s3] sm:$0x1] }
 0x10e   :  { %2057 = vmatprep.subr.mxu1 %v2370_v36 }
 0x10f   :  { %2058 = vmatpush3.msra.mxu1 %v2593_v40  ;;  %v899_v40 = vld [vmem:[#allocation3 + $0x78] sm:$0xff] }
 0x110   :  { %2059 = vmatprep.subr.mxu1 %v2370_v36 }
 0x111   :  { %2060 = vmatpush3.msra.mxu1 %v2600_v41 }
 0x112   :  { %2061 = vmatprep.subr.mxu1 %v2370_v36 }
 0x113   :  { %2062 = vmatpush3.msra.mxu1 %v2607_v42 }
 0x114   :  { %2063 = vmatprep.subr.mxu1 %v2370_v36 }
 0x115   :  { %2064 = vmatpush3.msra.mxu1 %v2614_v43  ;;  %v898_v43 = vld [vmem:[#allocation3 + $0x70] sm:$0xff] }
 0x116   :  { %2065 = vmatprep.subr.mxu1 %v2370_v36 }
 0x117   :  { %2066 = vmatpush3.msra.mxu1 %v2621_v44  ;;  %v897_v44 = vld [vmem:[#allocation3 + $0x68] sm:$0xff] }
 0x118   :  { %2067 = vmatprep.subr.mxu1 %v2370_v36 }
 0x119   :  { %2068 = vmatpush3.msra.mxu1 %v2628_v45  ;;  %v896_v45 = vld [vmem:[#allocation3 + $0x60] sm:$0xff] }
 0x11a   :  { %2069 = vmatprep.subr.mxu1 %v2370_v36 }
 0x11b   :  { %2070 = vmatpush3.msra.mxu1 %v2635_v46  ;;  %v895_v46 = vld [vmem:[#allocation3 + $0x58] sm:$0xff] }
 0x11c   :  { %2071 = vmatprep.subr.mxu1 %v2370_v36 }
 0x11d   :  { %2072 = vmatpush3.msra.mxu1 %v2642_v47  ;;  %v894_v47 = vld [vmem:[#allocation3 + $0x50] sm:$0xff] }
 0x11e   :  { %2073 = vmatprep.subr.mxu1 %v2370_v36 }
 0x11f   :  { %2074 = vmatpush3.msra.mxu1 %v2649_v48  ;;  %v913_v48 = vld [vmem:[#allocation3 + $0xc0] sm:$0xff] }
 0x120   :  { %2075 = vmatprep.subr.mxu1 %v2370_v36 }
 0x121   :  { %2076 = vmatpush3.msra.mxu1 %v2656_v49  ;;  %v912_v49 = vld [vmem:[#allocation3 + $0xb8] sm:$0xff] }
 0x122   :  { %2077 = vmatprep.subr.mxu1 %v2370_v36 }
 0x123   :  { %2078 = vmatpush3.msra.mxu1 %v2663_v50  ;;  %v911_v50 = vld [vmem:[#allocation3 + $0xb0] sm:$0xff] }
 0x124   :  { %2079 = vmatprep.subr.mxu1 %v2370_v36 }
 0x125   :  { %2080 = vmatpush3.msra.mxu1 %v2670_v51  ;;  %v910_v51 = vld [vmem:[#allocation3 + $0xa8] sm:$0xff] }
 0x126   :  { %2081 = vmatprep.subr.mxu1 %v2370_v36 }
 0x127   :  { %2082 = vmatpush3.msra.mxu1 %v535_v13 }
 0x128   :  { %2086 = vmatprep.subr.mxu1 %v2370_v36 }
 0x1c0   :  { %v457_v14 = vpop.f32.mrf.mxu1 }
 0x1c1   :  { %2049 = vmatmul.mubr.f32.vlgmr.msra.gmra.mxu0 %v457_v14 }
 0x1c2   :  { %v2004_v15 = vpop.f32.mrf.mxu1  ;;  %2097 = vmatpush3.msra.mxu0 %v920_v19 }
 0x1c3   :  { %2098 = vmatprep.subr.mxu0 %v919_v20 }
 0x1c4   :  { %2099 = vmatpush3.msra.mxu0 %v919_v20 }
 0x1c5   :  { %2100 = vmatprep.subr.mxu0 %v918_v21 }
 0x1c6   :  { %2101 = vmatpush3.msra.mxu0 %v918_v21 }
 0x1c7   :  { %2102 = vmatprep.subr.mxu0 %v917_v22 }
 0x1c8   :  { %v531_v16 = vpop.f32.mrf.mxu1  ;;  %2103 = vmatpush3.msra.mxu0 %v917_v22 }
 0x1c9   :  { %2084 = vmatmul.mubr.f32.vlgmr.msra.gmra.mxu1 %v531_v16  ;;  %2104 = vmatprep.subr.mxu0 %v916_v23 }
 0x1ca   :  { %v2015_v17 = vpop.f32.mrf.mxu1  ;;  %2088 = vmatprep.mubr.msk.f32.mxu1 %vm2371_vm1, %v2370_v36  ;;  %2087 = vmatpush3.msra.mxu1 %v703_v18 }
 0x1cb   :  { %2091 = vmatprep.subr.mxu1 %v2370_v36  ;;  %2105 = vmatpush3.msra.mxu0 %v916_v23 }
 0x1cc   :  { %2106 = vmatprep.subr.mxu0 %v915_v24 }
 0x1cd   :  { %2107 = vmatpush3.msra.mxu0 %v915_v24 }
 0x1ce   :  { %2108 = vmatprep.subr.mxu0 %v914_v25 }
 0x1cf   :  { %2109 = vmatpush3.msra.mxu0 %v914_v25 }
 0x1d0   :  { %2110 = vmatprep.subr.mxu0 %v913_v48 }
 0x1d1   :  { %2111 = vmatpush3.msra.mxu0 %v913_v48 }
 0x1d2   :  { %2112 = vmatprep.subr.mxu0 %v912_v49 }
 0x1d3   :  { %2113 = vmatpush3.msra.mxu0 %v912_v49 }
 0x1d4   :  { %2114 = vmatprep.subr.mxu0 %v911_v50 }
 0x1d5   :  { %2115 = vmatpush3.msra.mxu0 %v911_v50  ;;  %v2779_v50 = vld [vmem:[%s2988_s9 + $0x78] sm:$0xff] }
 0x1d6   :  { %2116 = vmatprep.subr.mxu0 %v910_v51 }
 0x1d7   :  { %2117 = vmatpush3.msra.mxu0 %v910_v51  ;;  %v2785_v51 = vld [vmem:[%s2988_s9 + $0x70] sm:$0xff] }
 0x1d8   :  { %2118 = vmatprep.subr.mxu0 %v909_v53 }
 0x1d9   :  { %2119 = vmatpush3.msra.mxu0 %v909_v53  ;;  %v2799_v53 = vld [vmem:[%s2988_s9 + $0x60] sm:$0xff] }
 0x1da   :  { %2120 = vmatprep.subr.mxu0 %v908_v55 }
 0x1db   :  { %2121 = vmatpush3.msra.mxu0 %v908_v55  ;;  %v2813_v55 = vld [vmem:[%s2988_s9 + $0x50] sm:$0xff] }
 0x1dc   :  { %2122 = vmatprep.subr.mxu0 %v907_v57 }
 0x1dd   :  { %2123 = vmatpush3.msra.mxu0 %v907_v57  ;;  %v2827_v57 = vld [vmem:[%s2988_s9 + $0x40] sm:$0xff] }
 0x1de   :  { %2124 = vmatprep.subr.mxu0 %v906_v59 }
 0x1df   :  { %2125 = vmatpush3.msra.mxu0 %v906_v59  ;;  %v2841_v59 = vld [vmem:[%s2988_s9 + $0x30] sm:$0xff] }
 0x1e0   :  { %2126 = vmatprep.subr.mxu0 %v905_v61 }
 0x1e1   :  { %2127 = vmatpush3.msra.mxu0 %v905_v61  ;;  %v2855_v61 = vld [vmem:[%s2988_s9 + $0x20] sm:$0xff] }
 0x1e2   :  { %2172 = vmatprep.subr.mxu0 %v1111_v63 }
 0x281   :  { %v617_v26 = vpop.f32.mrf.mxu0 }
 0x282   :  { %v692_v28 = vmul.f32 0.001953125, %v617_v26 }
 0x283   :  { %v2050_v27 = vpop.f32.mrf.mxu0 }
 0x284   :  { %v694_v30 = vmul.f32 %v692_v28, %v692_v28 }
 0x289   :  { %v687_v29 = vpop.f32.mrf.mxu1 }
 0x28a   :  { %v693_v31 = vmul.f32 0.001953125, %v687_v29 }
 0x28b   :  { %v2085_v32 = vpop.f32.mrf.mxu1 }
 0x28c   :  { %v695_v33 = vsub.f32 %v693_v31, %v694_v30  ;;  %v1107_v31 = vld [vmem:[#allocation3 + $0x158] sm:$0xff] }
 0x28e   :  { %v697_v34 = vadd.f32 1e-05, %v695_v33 }
 0x290   :  { %2319 = vrsqrt.f32 %v697_v34  ;;  %v1106_v34 = vld [vmem:[#allocation3 + $0x150] sm:$0xff] }
 0x29d   :  { %v2320_v37 = vpop.eup %2319 }
 0x29e   :  { %v699_v38 = vmul.f32 %v2320_v37, %v696_v35  ;;  %v1105_v35 = vld [vmem:[#allocation3 + $0x148] sm:$0xff] }
 0x2a0   :  { %2089 = vmatmul.mubr.msk.f32.vlgmr.msra.gmra.mxu1 %vm704_vm3, %v699_v38  ;;  %v701_v41 = vmul.f32 %v699_v38, %v692_v28  ;;  %v1104_v38 = vld [vmem:[#allocation3 + $0x140] sm:$0xff] }
 0x2a1   :  { %2092 = vmatpush3.msra.mxu1 %v703_v18  ;;  %2093 = vmatprep.mubr.msk.f32.mxu1 %vm2371_vm1, %v2370_v36 }
 0x2a2   :  { %v702_v42 = vsub.f32 %v700_v39, %v701_v41  ;;  %2134 = vmatprep.subr.mxu1 %v899_v40  ;;  %v1103_v39 = vld [vmem:[#allocation3 + $0x138] sm:$0xff]  ;;  %v1101_v41 = vld [vmem:[#allocation3 + $0x128] sm:$0xff] }
 0x2a4   :  { %2094 = vmatmul.mubr.msk.f32.vlgmr.msra.gmra.mxu1 %vm704_vm3, %v702_v42  ;;  %v1100_v42 = vld [vmem:[#allocation3 + $0x120] sm:$0xff] }
 0x2a5   :  { %2135 = vmatpush3.msra.mxu1 %v899_v40  ;;  %v1102_v40 = vld [vmem:[#allocation3 + $0x130] sm:$0xff] }
 0x2a6   :  { %2136 = vmatprep.subr.mxu1 %v898_v43 }
 0x2a7   :  { %2137 = vmatpush3.msra.mxu1 %v898_v43  ;;  %v1099_v43 = vld [vmem:[#allocation3 + $0x118] sm:$0xff] }
 0x2a8   :  { %2138 = vmatprep.subr.mxu1 %v897_v44 }
 0x2a9   :  { %2139 = vmatpush3.msra.mxu1 %v897_v44  ;;  %v1098_v44 = vld [vmem:[#allocation3 + $0x110] sm:$0xff] }
 0x2aa   :  { %2140 = vmatprep.subr.mxu1 %v896_v45 }
 0x2ab   :  { %2141 = vmatpush3.msra.mxu1 %v896_v45  ;;  %v1097_v45 = vld [vmem:[#allocation3 + $0x108] sm:$0xff] }
 0x2ac   :  { %2142 = vmatprep.subr.mxu1 %v895_v46 }
 0x2ad   :  { %2143 = vmatpush3.msra.mxu1 %v895_v46  ;;  %v1096_v46 = vld [vmem:[#allocation3 + $0x100] sm:$0xff] }
 0x2ae   :  { %2144 = vmatprep.subr.mxu1 %v894_v47 }
 0x2af   :  { %2145 = vmatpush3.msra.mxu1 %v894_v47 }
 0x2b0   :  { %2146 = vmatprep.subr.mxu1 %v893_v52 }
 0x2b1   :  { %2147 = vmatpush3.msra.mxu1 %v893_v52  ;;  %v2792_v52 = vld [vmem:[%s2988_s9 + $0x68] sm:$0xff] }
 0x2b2   :  { %2148 = vmatprep.subr.mxu1 %v892_v54 }
 0x2b3   :  { %2149 = vmatpush3.msra.mxu1 %v892_v54  ;;  %v2806_v54 = vld [vmem:[%s2988_s9 + $0x58] sm:$0xff] }
 0x2b4   :  { %2150 = vmatprep.subr.mxu1 %v891_v56 }
 0x2b5   :  { %2151 = vmatpush3.msra.mxu1 %v891_v56  ;;  %v2820_v56 = vld [vmem:[%s2988_s9 + $0x48] sm:$0xff] }
 0x2b6   :  { %2152 = vmatprep.subr.mxu1 %v890_v58 }
 0x2b7   :  { %2153 = vmatpush3.msra.mxu1 %v890_v58  ;;  %v2834_v58 = vld [vmem:[%s2988_s9 + $0x38] sm:$0xff] }
 0x2b8   :  { %2154 = vmatprep.subr.mxu1 %v889_v60 }
 0x2b9   :  { %2155 = vmatpush3.msra.mxu1 %v889_v60  ;;  %v2848_v60 = vld [vmem:[%s2988_s9 + $0x28] sm:$0xff] }
 0x2ba   :  { %2156 = vmatprep.subr.mxu1 %v888_v62 }
 0x2bb   :  { %2157 = vmatpush3.msra.mxu1 %v888_v62  ;;  %v2862_v62 = vld [vmem:[%s2988_s9 + $0x18] sm:$0xff] }
 0x2bc   :  { %2158 = vmatprep.subr.mxu1 %v887_v0 }
 0x2bd   :  { %2159 = vmatpush3.msra.mxu1 %v887_v0  ;;  %v2876_v0 = vld [vmem:[%s2988_s9 + $0x8] sm:$0xff] }
 0x2be   :  { %2160 = vmatprep.subr.mxu1 %v886_v2 }
 0x2bf   :  { %2161 = vmatpush3.msra.mxu1 %v886_v2 }
 0x2c0   :  { %2162 = vmatprep.subr.mxu1 %v885_v3 }
 0x2c1   :  { %2163 = vmatpush3.msra.mxu1 %v885_v3 }
 0x2c2   :  { %2164 = vmatprep.subr.mxu1 %v884_v5 }
 0x2c3   :  { %2165 = vmatpush3.msra.mxu1 %v884_v5 }
 0x2c4   :  { %2210 = vmatprep.subr.mxu1 %v2370_v36 }
 0x360   :  { %v774_v12 = vpop.f32.mrf.mxu1 }
 0x361   :  { %v854_v13 = vrot.slane %v774_v12, %v2763_v11 }
 0x362   :  { %v2090_v14 = vpop.f32.mrf.mxu1 }
 0x363   :  { %v855_v15 = vmul.f32 %v854_v13, %v2686_v7  ;;  %v856_v17 = vmul.f32 %v854_v13, %v2682_v6  ;;  %v857_v18 = vmul.f32 %v854_v13, %v2678_v4  ;;  %v858_v19 = vmul.f32 %v854_v13, %v2676_v1  ;;  %v1110_v6 = vld [vmem:[#allocation3 + $0x170] sm:$0xff]  ;;  %v1109_v1 = vld [vmem:[#allocation3 + $0x168] sm:$0xff]  ;;  %v1108_v4 = vld [vmem:[#allocation3 + $0x160] sm:$0xff] }
 0x364   :  { %v847_v16 = vpop.f32.mrf.mxu1 }
 0x365   :  { %v862_v20 = vrot.slane %v847_v16, %v2763_v11 }
 0x366   :  { %v2095_v21 = vpop.f32.mrf.mxu1 }
 0x367   :  { %v863_v22 = vadd.f32 %v862_v20, %v855_v15  ;;  %v864_v23 = vadd.f32 %v862_v20, %v856_v17  ;;  %v865_v24 = vadd.f32 %v862_v20, %v857_v18  ;;  %v866_v25 = vadd.f32 %v862_v20, %v858_v19 }
 0x369   :  { %v867_v26 = vmax.f32 %v863_v22, 0.0  ;;  %v868_v27 = vmax.f32 %v864_v23, 0.0  ;;  %v869_v28 = vmax.f32 %v865_v24, 0.0  ;;  %v870_v29 = vmax.f32 %v866_v25, 0.0 }
 0x36b   :  { %876 = vst [vmem:[#allocation2 + $0x1] sm:$0xff] %v867_v26  ;;  %877 = vst [vmem:[#allocation2 + $0x9] sm:$0xff] %v868_v27  ;;  %2128 = vmatprep.mubr.f32.mxu0 %v867_v26 }
 0x36c   :  { %878 = vst [vmem:[#allocation2 + $0x13] sm:$0xff] %v869_v28  ;;  %879 = vst [vmem:[#allocation2 + $0x1b] sm:$0xff] %v870_v29  ;;  %2129 = vmatmul.mubr.f32.vlgmr.msra.gmra.mxu0 %v868_v27 }
 0x36d   :  { %2173 = vmatpush3.msra.mxu0 %v1111_v63  ;;  %2131 = vmatprep.mubr.f32.mxu0 %v869_v28  ;;  %v2869_v63 = vld [vmem:[%s2988_s9 + $0x10] sm:$0xff] }
 0x36e   :  { %2174 = vmatprep.subr.mxu0 %v1110_v6 }
 0x36f   :  { %2175 = vmatpush3.msra.mxu0 %v1110_v6 }
 0x370   :  { %2176 = vmatprep.subr.mxu0 %v1109_v1  ;;  %2132 = vmatmul.mubr.f32.gmra.mxu0 %v870_v29 }
 0x371   :  { %2177 = vmatpush3.msra.mxu0 %v1109_v1 }
 0x372   :  { %v880_v7 = vld [vmem:[#allocation2] sm:$0xff]  ;;  %v881_v30 = vld [vmem:[#allocation2 + $0x8] sm:$0xff]  ;;  %2178 = vmatprep.subr.mxu0 %v1108_v4 }
 0x373   :  { %2166 = vmatprep.mubr.f32.mxu1 %v880_v7  ;;  %v1091_v32 = vld [vmem:[#allocation2 + $0x2] sm:$0xff]  ;;  %2179 = vmatpush3.msra.mxu0 %v1108_v4  ;;  %v882_v33 = vld [vmem:[#allocation2 + $0x12] sm:$0xff]  ;;  %v883_v37 = vld [vmem:[#allocation2 + $0x1a] sm:$0xff] }
 0x374   :  { %2167 = vmatmul.mubr.f32.vlgmr.msra.gmra.mxu1 %v881_v30  ;;  %2204 = vmatprep.mubr.f32.mxu0 %v1091_v32  ;;  %v1092_v47 = vld [vmem:[#allocation2 + $0xa] sm:$0xff]  ;;  %v1093_v48 = vld [vmem:[#allocation2 + $0x14] sm:$0xff]  ;;  %v1094_v49 = vld [vmem:[#allocation2 + $0x1c] sm:$0xff] }
 0x375   :  { %2169 = vmatprep.mubr.f32.mxu1 %v882_v33  ;;  %2180 = vmatprep.subr.mxu0 %v1107_v31 }
 0x376   :  { %2181 = vmatpush3.msra.mxu0 %v1107_v31  ;;  %v1512_v31 = vld [vmem:[%s2989_s10] sm:$0xff] }
 0x377   :  { %2182 = vmatprep.subr.mxu0 %v1106_v34 }
 0x378   :  { %2170 = vmatmul.mubr.f32.gmra.mxu1 %v883_v37  ;;  %2183 = vmatpush3.msra.mxu0 %v1106_v34 }
 0x379   :  { %2184 = vmatprep.subr.mxu0 %v1105_v35  ;;  %2218 = vmatprep.mubr.msk.f32.mxu1 %vm2371_vm1, %v2370_v36 }
 0x37a   :  { %2185 = vmatpush3.msra.mxu0 %v1105_v35 }
 0x37b   :  { %2186 = vmatprep.subr.mxu0 %v1104_v38 }
 0x37c   :  { %2187 = vmatpush3.msra.mxu0 %v1104_v38 }
 0x37d   :  { %2188 = vmatprep.subr.mxu0 %v1103_v39 }
 0x37e   :  { %2189 = vmatpush3.msra.mxu0 %v1103_v39 }
 0x37f   :  { %2190 = vmatprep.subr.mxu0 %v1102_v40 }
 0x380   :  { %2191 = vmatpush3.msra.mxu0 %v1102_v40 }
 0x381   :  { %2192 = vmatprep.subr.mxu0 %v1101_v41 }
 0x382   :  { %2193 = vmatpush3.msra.mxu0 %v1101_v41 }
 0x383   :  { %2194 = vmatprep.subr.mxu0 %v1100_v42 }
 0x384   :  { %2195 = vmatpush3.msra.mxu0 %v1100_v42  ;;  %v1505_v42 = vld [vmem:[%s2986_s7] sm:$0x1]  ;;  %s2373_s7 = smov [#allocation6]  }
 0x385   :  { %2196 = vmatprep.subr.mxu0 %v1099_v43 }
 0x386   :  { %2197 = vmatpush3.msra.mxu0 %v1099_v43 }
 0x387   :  { %2198 = vmatprep.subr.mxu0 %v1098_v44 }
 0x388   :  { %2199 = vmatpush3.msra.mxu0 %v1098_v44 }
 0x389   :  { %2200 = vmatprep.subr.mxu0 %v1097_v45 }
 0x38a   :  { %2201 = vmatpush3.msra.mxu0 %v1097_v45  ;;  %v1509_v45 = vld [vmem:[%s2987_s8] sm:$0x1]  ;;  %s1688_s8 = sshll.u32 %s2373_s7, 4  ;;  %s1689_s8 = int_to_ptr.vmem [resolvable:$true] %s1688_s8 }
 0x38b   :  { %2202 = vmatprep.subr.mxu0 %v1096_v46  ;;  %s2343_s28 = scalar_lea.vmem %s1689_s8, 512  ;;  %p2348_p6 = scmp.lt.s32.totalorder %s1689_s8, %s1689_s8 }
 0x38c   :  { %2203 = vmatpush3.msra.mxu0 %v1096_v46  ;;  %p2344_p5 = scmp.ne.s32.totalorder %s1689_s8, %s2343_s28  ;;  %p2349_p7 = scmp.lt.s32.totalorder %s2343_s28, %s2343_s28 }
 0x38d   :  { %2205 = vmatmul.mubr.f32.vlgmr.msra.gmra.mxu0 %v1092_v47  ;;  %2267 = vmatprep.subr.mxu0 %v2370_v36 }
 0x38e   :  { %2207 = vmatprep.mubr.f32.mxu0 %v1093_v48  ;;  %2268 = vmatpush3.msra.mxu0 %v2779_v50  ;;  %p2350_p8 = por %p2349_p7, %p2348_p6 }
 0x38f   :  { %2269 = vmatprep.subr.mxu0 %v2370_v36 }
 0x390   :  { %2270 = vmatpush3.msra.mxu0 %v2785_v51  ;;  %p2351_p9 = pnand %p2350_p8, %p2344_p5 }
 0x391   :  { %2208 = vmatmul.mubr.f32.gmra.mxu0 %v1094_v49  ;;  %2271 = vmatprep.subr.mxu0 %v2370_v36 }
 0x392   :  { %2299 = vmatprep.mubr.msk.f32.mxu0 %vm2371_vm1, %v2370_v36  ;;  %2272 = vmatpush3.msra.mxu0 %v2792_v52 }
 0x393   :  { %2273 = vmatprep.subr.mxu0 %v2370_v36 }
 0x394   :  { %2274 = vmatpush3.msra.mxu0 %v2799_v53 }
 0x395   :  { %2275 = vmatprep.subr.mxu0 %v2370_v36 }
 0x396   :  { %2276 = vmatpush3.msra.mxu0 %v2806_v54 }
 0x397   :  { %2277 = vmatprep.subr.mxu0 %v2370_v36 }
 0x398   :  { %2278 = vmatpush3.msra.mxu0 %v2813_v55 }
 0x399   :  { %2279 = vmatprep.subr.mxu0 %v2370_v36 }
 0x39a   :  { %2280 = vmatpush3.msra.mxu0 %v2820_v56 }
 0x39b   :  { %2281 = vmatprep.subr.mxu0 %v2370_v36 }
 0x39c   :  { %2282 = vmatpush3.msra.mxu0 %v2827_v57 }
 0x39d   :  { %2283 = vmatprep.subr.mxu0 %v2370_v36 }
 0x39e   :  { %2284 = vmatpush3.msra.mxu0 %v2834_v58 }
 0x39f   :  { %2285 = vmatprep.subr.mxu0 %v2370_v36 }
 0x3a0   :  { %2286 = vmatpush3.msra.mxu0 %v2841_v59 }
 0x3a1   :  { %2287 = vmatprep.subr.mxu0 %v2370_v36 }
 0x3a2   :  { %2288 = vmatpush3.msra.mxu0 %v2848_v60 }
 0x3a3   :  { %2289 = vmatprep.subr.mxu0 %v2370_v36 }
 0x3a4   :  { %2290 = vmatpush3.msra.mxu0 %v2855_v61 }
 0x3a5   :  { %2291 = vmatprep.subr.mxu0 %v2370_v36 }
 0x3a6   :  { %2292 = vmatpush3.msra.mxu0 %v2862_v62 }
 0x3a7   :  { %2293 = vmatprep.subr.mxu0 %v2370_v36 }
 0x3a8   :  { %2294 = vmatpush3.msra.mxu0 %v2869_v63 }
 0x3a9   :  { %2295 = vmatprep.subr.mxu0 %v2370_v36 }
 0x3aa   :  { %2296 = vmatpush3.msra.mxu0 %v2876_v0 }
 0x3ab   :  { %2297 = vmatprep.subr.mxu0 %v2370_v36 }
 0x42c   :  { %v2130_v2 = vpop.f32.mrf.mxu0 }
 0x42e   :  { %v987_v5 = vpop.f32.mrf.mxu0 }
 0x430   :  { %v2133_v10 = vpop.f32.mrf.mxu0 }
 0x432   :  { %v997_v13 = vpop.f32.mrf.mxu0 }
 0x434   :  { %v2168_v3 = vpop.f32.mrf.mxu1 }
 0x435   :  { %v1078_v22 = vadd.f32 %v2168_v3, %v2130_v2 }
 0x436   :  { %v1072_v8 = vpop.f32.mrf.mxu1 }
 0x437   :  { %v1073_v24 = vadd.f32 %v1072_v8, %v987_v5 }
 0x438   :  { %v2171_v12 = vpop.f32.mrf.mxu1 }
 0x439   :  { %v1088_v17 = vadd.f32 %v2171_v12, %v2133_v10 }
 0x43a   :  { %v1082_v15 = vpop.f32.mrf.mxu1 }
 0x43b   :  { %v1083_v19 = vadd.f32 %v1082_v15, %v997_v13 }
 0x44d   :  { %v2206_v14 = vpop.f32.mrf.mxu0 }
 0x44e   :  { %v2887_v25 = vadd.f32 %v2206_v14, %v1078_v22 }
 0x44f   :  { %v1178_v16 = vpop.f32.mrf.mxu0 }
 0x450   :  { %v2891_v26 = vadd.f32 %v1178_v16, %v1073_v24  ;;  %v1272_v29 = vmul.f32 %v2887_v25, %v2887_v25 }
 0x451   :  { %v2209_v18 = vpop.f32.mrf.mxu0 }
 0x452   :  { %v2881_v20 = vadd.f32 %v2209_v18, %v1088_v17  ;;  %v1271_v6 = vmul.f32 %v2891_v26, %v2891_v26 }
 0x453   :  { %v1188_v21 = vpop.f32.mrf.mxu0 }
 0x454   :  { %v2883_v23 = vadd.f32 %v1188_v21, %v1083_v19  ;;  %2211 = vmatpush3.msra.mxu1 %v2881_v20  ;;  %v1274_v27 = vmul.f32 %v2881_v20, %v2881_v20 }
 0x455   :  { %2212 = vmatprep.subr.mxu1 %v2370_v36 }
 0x456   :  { %2213 = vmatpush3.msra.mxu1 %v2883_v23  ;;  %v1273_v28 = vmul.f32 %v2883_v23, %v2883_v23 }
 0x457   :  { %2214 = vmatprep.subr.mxu1 %v2370_v36 }
 0x458   :  { %2215 = vmatpush3.msra.mxu1 %v2887_v25 }
 0x459   :  { %2216 = vmatprep.subr.mxu1 %v2370_v36 }
 0x45a   :  { %2217 = vmatpush3.msra.mxu1 %v2891_v26 }
 0x45b   :  { %2219 = vmatmul.mubr.msk.f32.vlgmr.msra.gmra.mxu1 %vm387_vm2, %v2372_v9  ;;  %2221 = vmatprep.subr.mxu1 %v2370_v36 }
 0x45c   :  { %2222 = vmatpush3.msra.mxu1 %v1274_v27  ;;  %2229 = vmatprep.mubr.msk.f32.mxu1 %vm2371_vm1, %v2370_v36 }
 0x45d   :  { %2223 = vmatprep.subr.mxu1 %v2370_v36 }
 0x45e   :  { %2224 = vmatpush3.msra.mxu1 %v1273_v28 }
 0x45f   :  { %2225 = vmatprep.subr.mxu1 %v2370_v36 }
 0x460   :  { %2226 = vmatpush3.msra.mxu1 %v1272_v29 }
 0x461   :  { %2227 = vmatprep.subr.mxu1 %v2370_v36 }
 0x462   :  { %2228 = vmatpush3.msra.mxu1 %v1271_v6 }
 0x463   :  { %2230 = vmatmul.mubr.msk.f32.vlgmr.msra.gmra.mxu1 %vm387_vm2, %v2372_v9  ;;  %2232 = vmatprep.subr.mxu1 %v2370_v36  ;;  %v1345_v9 = vld [vmem:[%s2988_s9] sm:$0xff] }
 0x464   :  { %2233 = vmatpush3.msra.mxu1 %v2779_v50  ;;  %2264 = vmatprep.mubr.msk.f32.mxu1 %vm2371_vm1, %v2370_v36 }
 0x465   :  { %2234 = vmatprep.subr.mxu1 %v2370_v36  ;;  %2298 = vmatpush3.msra.mxu0 %v1345_v9 }
 0x466   :  { %2235 = vmatpush3.msra.mxu1 %v2785_v51 }
 0x467   :  { %2236 = vmatprep.subr.mxu1 %v2370_v36 }
 0x468   :  { %2237 = vmatpush3.msra.mxu1 %v2792_v52 }
 0x469   :  { %2238 = vmatprep.subr.mxu1 %v2370_v36 }
 0x46a   :  { %2239 = vmatpush3.msra.mxu1 %v2799_v53 }
 0x46b   :  { %2240 = vmatprep.subr.mxu1 %v2370_v36 }
 0x46c   :  { %2241 = vmatpush3.msra.mxu1 %v2806_v54 }
 0x46d   :  { %2242 = vmatprep.subr.mxu1 %v2370_v36 }
 0x46e   :  { %2243 = vmatpush3.msra.mxu1 %v2813_v55 }
 0x46f   :  { %2244 = vmatprep.subr.mxu1 %v2370_v36 }
 0x470   :  { %2245 = vmatpush3.msra.mxu1 %v2820_v56 }
 0x471   :  { %2246 = vmatprep.subr.mxu1 %v2370_v36 }
 0x472   :  { %2247 = vmatpush3.msra.mxu1 %v2827_v57 }
 0x473   :  { %2248 = vmatprep.subr.mxu1 %v2370_v36 }
 0x474   :  { %2249 = vmatpush3.msra.mxu1 %v2834_v58 }
 0x475   :  { %2250 = vmatprep.subr.mxu1 %v2370_v36 }
 0x476   :  { %2251 = vmatpush3.msra.mxu1 %v2841_v59 }
 0x477   :  { %2252 = vmatprep.subr.mxu1 %v2370_v36 }
 0x478   :  { %2253 = vmatpush3.msra.mxu1 %v2848_v60 }
 0x479   :  { %2254 = vmatprep.subr.mxu1 %v2370_v36 }
 0x47a   :  { %2255 = vmatpush3.msra.mxu1 %v2855_v61 }
 0x47b   :  { %2256 = vmatprep.subr.mxu1 %v2370_v36 }
 0x47c   :  { %2257 = vmatpush3.msra.mxu1 %v2862_v62 }
 0x47d   :  { %2258 = vmatprep.subr.mxu1 %v2370_v36 }
 0x47e   :  { %2259 = vmatpush3.msra.mxu1 %v2869_v63 }
 0x47f   :  { %2260 = vmatprep.subr.mxu1 %v2370_v36 }
 0x480   :  { %2261 = vmatpush3.msra.mxu1 %v2876_v0 }
 0x481   :  { %2262 = vmatprep.subr.mxu1 %v2370_v36 }
 0x482   :  { %2263 = vmatpush3.msra.mxu1 %v1345_v9 }
 0x483   :  { %2302 = vmatprep.subr.mxu1 %v2370_v36 }
 0x51b   :  { %v1267_v1 = vpop.f32.mrf.mxu1 }
 0x51c   :  { %2265 = vmatmul.mubr.f32.vlgmr.msra.gmra.mxu1 %v1267_v1 }
 0x51d   :  { %v2220_v4 = vpop.f32.mrf.mxu1  ;;  %2304 = vmatprep.mubr.msk.f32.mxu1 %vm2371_vm1, %v2370_v36  ;;  %2303 = vmatpush3.msra.mxu1 %v1512_v31 }
 0x51e   :  { %2307 = vmatprep.subr.mxu1 %v2370_v36 }
 0x523   :  { %v1341_v7 = vpop.f32.mrf.mxu1 }
 0x524   :  { %2300 = vmatmul.mubr.f32.vlgmr.msra.gmra.mxu0 %v1341_v7 }
 0x525   :  { %v2231_v30 = vpop.f32.mrf.mxu1 }
 0x5dc   :  { %v1427_v32 = vpop.f32.mrf.mxu1 }
 0x5dd   :  { %v1501_v34 = vmul.f32 0.001953125, %v1427_v32 }
 0x5de   :  { %v2266_v33 = vpop.f32.mrf.mxu1 }
 0x5df   :  { %v1503_v37 = vmul.f32 %v1501_v34, %v1501_v34 }
 0x5e4   :  { %v1497_v35 = vpop.f32.mrf.mxu0 }
 0x5e5   :  { %v1502_v38 = vmul.f32 0.001953125, %v1497_v35 }
 0x5e6   :  { %v2301_v39 = vpop.f32.mrf.mxu0 }
 0x5e7   :  { %v1504_v40 = vsub.f32 %v1502_v38, %v1503_v37 }
 0x5e9   :  { %v1506_v41 = vadd.f32 1e-05, %v1504_v40 }
 0x5eb   :  { %2321 = vrsqrt.f32 %v1506_v41 }
 0x5f8   :  { %v2322_v43 = vpop.eup %2321 }
 0x5f9   :  { %v1508_v44 = vmul.f32 %v2322_v43, %v1505_v42 }
 0x5fb   :  { %2305 = vmatmul.mubr.msk.f32.vlgmr.msra.gmra.mxu1 %vm704_vm3, %v1508_v44  ;;  %v1510_v46 = vmul.f32 %v1508_v44, %v1501_v34 }
 0x5fc   :  { %2308 = vmatpush3.msra.mxu1 %v1512_v31  ;;  %2309 = vmatprep.mubr.msk.f32.mxu1 %vm2371_vm1, %v2370_v36 }
 0x5fd   :  { %v1511_v47 = vsub.f32 %v1509_v45, %v1510_v46 }
 0x5ff   :  { %2310 = vmatmul.mubr.msk.f32.vlgmr.msra.gmra.mxu1 %vm704_vm3, %v1511_v47 }
 0x6bb   :  { %v1582_v48 = vpop.f32.mrf.mxu1 }
 0x6bc   :  { %v1662_v49 = vrot.slane %v1582_v48, %v2763_v11 }
 0x6bd   :  { %v2306_v50 = vpop.f32.mrf.mxu1 }
 0x6be   :  { %v1663_v51 = vmul.f32 %v1662_v49, %v2891_v26  ;;  %v1664_v53 = vmul.f32 %v1662_v49, %v2887_v25  ;;  %v1665_v54 = vmul.f32 %v1662_v49, %v2883_v23  ;;  %v1666_v55 = vmul.f32 %v1662_v49, %v2881_v20 }
 0x6bf   :  { %v1655_v52 = vpop.f32.mrf.mxu1 }
 0x6c0   :  { %v1670_v56 = vrot.slane %v1655_v52, %v2763_v11 }
 0x6c1   :  { %v2311_v57 = vpop.f32.mrf.mxu1 }
 0x6c2   :  { %v1671_v36 = vadd.f32 %v1670_v56, %v1663_v51  ;;  %v1672_v58 = vadd.f32 %v1670_v56, %v1664_v53  ;;  %v1673_v59 = vadd.f32 %v1670_v56, %v1665_v54  ;;  %v1674_v60 = vadd.f32 %v1670_v56, %v1666_v55 }
 0x6c4   :  { %v1675_v61 = vmax.f32 %v1671_v36, 0.0  ;;  %v1676_v62 = vmax.f32 %v1672_v58, 0.0  ;;  %v1677_v63 = vmax.f32 %v1673_v59, 0.0  ;;  %v1678_v0 = vmax.f32 %v1674_v60, 0.0 }
 0x6c6   :  { %1679 = vst [vmem:[#allocation6] sm:$0xff] %v1675_v61  ;;  %1680 = vst [vmem:[#allocation6 + $0x8] sm:$0xff] %v1676_v62 }
 0x6c7   :  { %1681 = vst [vmem:[#allocation6 + $0x10] sm:$0xff] %v1677_v63  ;;  %1682 = vst [vmem:[#allocation6 + $0x18] sm:$0xff] %v1678_v0 }
 0x6c8   :  { %2354 = shalt.err (!%p2351_p9)
}
 0x6c9   :  { %1694 = dma.vmem_to_hbm [thread:$0]  %s1689_s8, 512, %s2990_s11, [#allocation5], %s2368_s20, %s2368_s20, %s2369_s21  }
 0x6ca   :  { %2365 = dma.done.wait [#allocation5], 512  }
 0x6cb   :  { %2366 = vsyncadd [#allocation5], 4294966784 }
 0x6cc   :  { %1698 = vsyncpa [#allocation4], 1 }
 0x6cd   :  { %1699 = vsyncpa [#allocation5], 1 }

</bundles_post_ra>
